<compile_context>
chip_gen: v6e
topology: v6e:2x2x1
jax: 0.10.0
libtpu: 0.0.40
codegen_flags: <defaults>
</compile_context>

<pallas_src>
import functools

import jax
import jax.numpy as jnp
from jax.experimental import pallas as pl
from jax.experimental.pallas import tpu as pltpu


def _round_up(a: int, b: int) -> int:
    return (a + b - 1) // b * b


def _vmem_capacity_bytes() -> int:
    """Generation-aware VMEM capacity (64 MiB fallback == v7x per-TC VMEM)."""
    try:
        cap = getattr(pltpu.get_tpu_info(), "vmem_capacity_bytes", None)
        if cap:
            return int(cap)
    except Exception:
        pass
    return 64 << 20


def _vmem_estimate(tc: int, tn: int, F: int, itemsize: int) -> int:
    """Upper-bound physical VMEM footprint (lane-padded) of one grid step."""
    f_lanes = _round_up(F, 128)
    acc = tc * f_lanes * 4 + tc * 128 * 4                 # f32 sum + count scratch
    onehot = tc * tn * 8                                   # bool mask + dtype casts
    xtiles = 2 * (tn * f_lanes * itemsize + 8 * tn * 4)    # dbl-buffered x + cluster map
    outs = 2 * (tc * f_lanes * 4 + tc * 128 * 4)           # dbl-buffered partial outputs
    return acc + onehot + xtiles + outs


def _choose_tiles(N, F, C, itemsize, vmem_cap, tile_n):
    budget = int(0.45 * vmem_cap)
    tn0 = _round_up(min(tile_n, _round_up(N, 128)), 128)

    # Preferred: a single cluster block -> x streamed from HBM exactly once.
    tc = _round_up(max(int(C), 1), 8)
    tn = tn0
    while tn > 128 and _vmem_estimate(tc, tn, F, itemsize) > budget:
        tn = _round_up(tn // 2, 128)
    if _vmem_estimate(tc, tn, F, itemsize) <= budget:
        return tn, tc, tc

    # Fallback for very large C: multiple cluster blocks (x re-streamed per block).
    tc, tn = 256, tn0
    while tn > 128 and _vmem_estimate(tc, tn, F, itemsize) > budget:
        tn = _round_up(tn // 2, 128)
    while tc > 8 and _vmem_estimate(tc, tn, F, itemsize) > budget:
        tc //= 2
    return tn, tc, _round_up(max(int(C), 1), tc)


def _cluster_pool_kernel(cmap_ref, x_ref, sum_ref, cnt_ref, acc_ref, cnt_acc_ref,
                         *, n_total, nt_per_split, compute_dtype, precision):
    # cmap_ref: (1, tN) int32        x_ref      : (tN, F)
    # sum_ref : (tC, F) f32          cnt_ref    : (tC, 1) f32
    # acc_ref : (tC, F) f32 scratch  cnt_acc_ref: (tC, 1) f32 scratch
    cb = pl.program_id(0)            # cluster block   (parallel)
    sp = pl.program_id(1)            # node-axis split (parallel; 2nd TC on v7x)
    t = pl.program_id(2)             # node tile       (arbitrary / reduction)
    tile_c = acc_ref.shape[0]
    tile_n = x_ref.shape[0]

    @pl.when(t == 0)
    def _init():
        acc_ref[...] = jnp.zeros_like(acc_ref)
        cnt_acc_ref[...] = jnp.zeros_like(cnt_acc_ref)

    base = (sp * nt_per_split + t) * tile_n      # first logical node of this tile

    # Ragged-tail handling in-kernel (no HBM padding of x / cluster_map):
    #  * out-of-range cluster-map lanes -> -1, matching no one-hot row, so they
    #    contribute to neither sums nor counts;
    #  * out-of-range x rows -> 0, so garbage (possibly NaN) tail data cannot
    #    leak through 0 * NaN in the matmul.
    col_ids = base + jax.lax.broadcasted_iota(jnp.int32, (1, tile_n), 1)
    cmap = jnp.where(col_ids < n_total, cmap_ref[...], -1)           # (1, tN)
    row_ids = base + jax.lax.broadcasted_iota(jnp.int32, (tile_n, 1), 0)
    xv = jnp.where(row_ids < n_total, x_ref[...], 0).astype(compute_dtype)

    row0 = cb * tile_c
    cluster_iota = jax.lax.broadcasted_iota(jnp.int32, (tile_c, tile_n), 0) + row0
    onehot_b = cluster_iota == cmap                                   # (tC, tN) bool

    # Segment-sum on the MXU (f32 accumulate); per-cluster counts via a
    # cross-lane reduce on the XLU — a different VLIW slot, effectively free.
    acc_ref[...] += jnp.dot(onehot_b.astype(compute_dtype), xv,
                            preferred_element_type=jnp.float32,
                            precision=precision)
    cnt_acc_ref[...] += jnp.sum(onehot_b.astype(jnp.float32), axis=-1,
                                keepdims=True)

    @pl.when(t == pl.num_programs(2) - 1)
    def _finalize():
        sum_ref[...] = acc_ref[...]
        cnt_ref[...] = cnt_acc_ref[...]


def cluster_pool(x, cluster_map, num_clusters, reduction="mean", tile_n=2048):
    """Scatter-<reduction> along dim 0: x [N, F], cluster_map [N] -> [C, F].

    Empty clusters yield 0 for 'mean' (denominator clamped to 1), matching
    torch_scatter. Cluster ids outside [0, C) are dropped (like segment_sum).
    """
    if reduction not in ("mean", "sum"):
        raise NotImplementedError(f"reduction={reduction!r} not supported")

    N, F = x.shape
    C = int(num_clusters)
    compute_dtype = x.dtype            # bf16 in -> native bf16 MXU path
    itemsize = jnp.dtype(compute_dtype).itemsize

    vmem_cap = _vmem_capacity_bytes()
    tn, tc, c_pad = _choose_tiles(N, F, C, itemsize, vmem_cap, tile_n)
    num_cb = c_pad // tc               # usually 1 -> x read from HBM exactly once
    total_nt = pl.cdiv(N, tn)

    # Node-axis split: gives the second TensorCore (v7x megacore) real work when
    # all clusters fit in a single block, without duplicating x HBM reads.
    # Partial sums/counts are combined with one trivial add in the wrapper.
    n_splits = 2 if (num_cb == 1 and total_nt >= 2 and total_nt % 2 == 0) else 1
    nt_per_split = total_nt // n_splits

    cmap2d = cluster_map.astype(jnp.int32).reshape(1, N)

    # f32 inputs: multi-pass MXU algorithm keeps segment sums ~f32-exact.
    precision = (jax.lax.Precision.HIGHEST
                 if jnp.dtype(compute_dtype) == jnp.float32 else None)

    kernel = functools.partial(
        _cluster_pool_kernel, n_total=N, nt_per_split=nt_per_split,
        compute_dtype=compute_dtype, precision=precision)

    grid = (num_cb, n_splits, nt_per_split)

    # Advisory cost estimate (includes the num_cb-fold re-read of x when the
    # multi-cluster-block fallback is active).
    flops = 2 * c_pad * (total_nt * tn) * F
    bytes_accessed = (num_cb * (N * F * itemsize + N * 4)
                      + n_splits * c_pad * (F + 1) * 4)
    vmem_limit = int(min(int(0.85 * vmem_cap),
                         max(32 << 20, 2 * _vmem_estimate(tc, tn, F, itemsize))))

    sums, cnts = pl.pallas_call(
        kernel,
        out_shape=[jax.ShapeDtypeStruct((n_splits, c_pad, F), jnp.float32),
                   jax.ShapeDtypeStruct((n_splits, c_pad, 1), jnp.float32)],
        grid=grid,
        in_specs=[
            # cluster-map tile (unpadded; ragged tail masked in-kernel)
            pl.BlockSpec((1, tn), lambda cb, sp, t: (0, sp * nt_per_split + t)),
            # x tile: feature dim at natural width (full-dim block) — no HBM
            # feature padding, no ones count-column.
            pl.BlockSpec((tn, F), lambda cb, sp, t: (sp * nt_per_split + t, 0)),
        ],
        out_specs=[
            pl.BlockSpec((None, tc, F), lambda cb, sp, t: (sp, cb, 0)),
            pl.BlockSpec((None, tc, 1), lambda cb, sp, t: (sp, cb, 0)),
        ],
        scratch_shapes=[pltpu.VMEM((tc, F), jnp.float32),   # f32 sum accumulator
                        pltpu.VMEM((tc, 1), jnp.float32)],  # f32 count accumulator
        compiler_params=pltpu.CompilerParams(
            dimension_semantics=("parallel", "parallel", "arbitrary"),
            vmem_limit_bytes=vmem_limit),
        cost_estimate=pl.CostEstimate(flops=flops, transcendentals=0,
                                      bytes_accessed=bytes_accessed),
    )(cmap2d, x)

    total = sums.sum(axis=0)                        # (c_pad, F) f32
    if reduction == "mean":
        counts = cnts.sum(axis=0)                   # (c_pad, 1) f32
        total = total / jnp.maximum(counts, 1.0)    # empty clusters -> 0
    return total[:C].astype(x.dtype)


class ClusterPooling:
    """JAX mirror of the PyTorch ClusterPooling module (forward + unpool)."""

    def __init__(self, target, reduction="mean"):
        self.target = target
        self.reduction = reduction

    def forward(self, data):
        cmap = data[f"scale{self.target}_cluster_map"]
        num_clusters = int(data[f"scale{self.target}_num_clusters"])
        data["x"] = cluster_pool(data["x"], cmap, num_clusters, self.reduction)
        data["edge_index"] = data[f"scale{self.target}_edge_index"]
        return data

    def unpool(self, data):
        # Pure gather; XLA handles this fine — no dedicated Pallas kernel needed.
        data["x"] = data["x"][data[f"scale{self.target}_cluster_map"]]
        data["edge_index"] = data[f"scale{self.target - 1}_edge_index"]
        return data


def _reference(x, cmap, C, reduction):
    s = jax.ops.segment_sum(x.astype(jnp.float32), cmap, num_segments=C)
    if reduction == "sum":
        return s
    cnt = jax.ops.segment_sum(jnp.ones((x.shape[0], 1), jnp.float32), cmap,
                              num_segments=C)
    return s / jnp.maximum(cnt, 1.0)


if __name__ == "__main__":
    key = jax.random.PRNGKey(0)
    k_x, k_c = jax.random.split(key)

    N, F, C = 384, 32, 16         # nodes, feature dim, clusters at target scale
    E_coarse = 24                 # edges in the coarse graph

    x = jax.random.normal(k_x, (N, F), dtype=jnp.float32)
    # Deterministic cluster map guaranteeing every cluster is non-empty.
    cluster_map = jax.random.permutation(k_c, jnp.arange(N, dtype=jnp.int32) % C)
    edge_index_coarse = jnp.stack(
        [jnp.arange(E_coarse, dtype=jnp.int32) % C,
         (jnp.arange(E_coarse, dtype=jnp.int32) * 3 + 1) % C],
        axis=0,
    )

    data = {
        "x": x,
        "edge_index": jnp.zeros((2, 4), jnp.int32),       # fine-scale edges (unused)
        "scale1_cluster_map": cluster_map,
        "scale1_edge_index": edge_index_coarse,
        "scale1_num_clusters": C,
    }

    pool = ClusterPooling(target=1, reduction="mean")
    out = pool.forward(data)
    pooled = jax.block_until_ready(out["x"])

    ref = _reference(x, cluster_map, C, "mean")
    assert pooled.shape == (C, F)
    assert out["edge_index"].shape == edge_index_coarse.shape
    assert jnp.allclose(pooled, ref, atol=1e-5, rtol=1e-5)

    # Extra coverage: ragged node tail (N % tile_n != 0), multi-step reduction
    # over the node-tile axis, and the 2-way parallel node split.
    extra_cases = [
        # (N, F, C, reduction, tile_n)
        (5000, 20, 37, "sum", 1024),    # grid (1,1,5): ragged tail + accumulation
        (4096, 24, 24, "mean", 1024),   # grid (1,2,2): node split + accumulation
    ]
    for (n2, f2, c2, red, t_n) in extra_cases:
        kx2, kc2 = jax.random.split(jax.random.PRNGKey(n2))
        x2 = jax.random.normal(kx2, (n2, f2), dtype=jnp.float32)
        cm2 = jax.random.randint(kc2, (n2,), 0, c2, dtype=jnp.int32)
        got = jax.block_until_ready(
            cluster_pool(x2, cm2, c2, reduction=red, tile_n=t_n))
        want = _reference(x2, cm2, c2, red)
        assert got.shape == (c2, f2)
        assert jnp.allclose(got.astype(jnp.float32), want,
                            atol=1e-4, rtol=1e-4), (n2, red)

    print("KERNEL_OK")
</pallas_src>

<mosaic_0001>
module attributes {stable_mosaic.version = 11 : i64} {
  func.func @_cluster_pool_kernel(%arg0: i32, %arg1: i32, %arg2: i32, %arg3: memref<1x384xi32, #tpu.memory_space<vmem>>, %arg4: memref<384x32xf32, #tpu.memory_space<vmem>>, %arg5: memref<1x16x32xf32, #tpu.memory_space<vmem>>, %arg6: memref<1x16x1xf32, #tpu.memory_space<vmem>>, %arg7: memref<16x32xf32, #tpu.memory_space<vmem>>, %arg8: memref<16x1xf32, #tpu.memory_space<vmem>>) attributes {dimension_semantics = [#tpu.dimension_semantics<parallel>, #tpu.dimension_semantics<parallel>, #tpu.dimension_semantics<arbitrary>], iteration_bounds = array<i64: 1, 1, 1>, scalar_prefetch = 0 : i64, scratch_operands = 2 : i64, tpu.core_type = #tpu.core_type<tc>, window_params = [{transform_indices = @transform_0, window_bounds = array<i64: 1, 384>}, {transform_indices = @transform_1, window_bounds = array<i64: 384, 32>}, {transform_indices = @transform_2, window_bounds = array<i64: 1, 16, 32>}, {transform_indices = @transform_3, window_bounds = array<i64: 1, 16, 1>}]} {
    %c0_i32 = arith.constant 0 : i32
    %0 = arith.cmpi eq, %arg2, %c0_i32 : i32
    %1 = arith.extui %0 : i1 to i32
    %c0_i32_0 = arith.constant 0 : i32
    %2 = arith.cmpi ne, %1, %c0_i32_0 : i32
    scf.if %2 {
      %cst_18 = arith.constant 0.000000e+00 : f32
      %47 = vector.broadcast %cst_18 : f32 to vector<16x32xf32>
      %c0_19 = arith.constant 0 : index
      %c0_20 = arith.constant 0 : index
      %48 = vector.load %arg7[%c0_19, %c0_20] : memref<16x32xf32, #tpu.memory_space<vmem>>, vector<16x32xf32>
      tpu.vector_store %arg7[%c0_19, %c0_20], %47 {strides = array<i32>} : memref<16x32xf32, #tpu.memory_space<vmem>>, vector<16x32xf32>,
      %cst_21 = arith.constant 0.000000e+00 : f32
      %49 = vector.broadcast %cst_21 : f32 to vector<16x1xf32>
      %c0_22 = arith.constant 0 : index
      %c0_23 = arith.constant 0 : index
      %50 = vector.load %arg8[%c0_22, %c0_23] : memref<16x1xf32, #tpu.memory_space<vmem>>, vector<16x1xf32>
      tpu.vector_store %arg8[%c0_22, %c0_23], %49 {strides = array<i32>} : memref<16x1xf32, #tpu.memory_space<vmem>>, vector<16x1xf32>,
    } else {
    }
    %c1_i32 = arith.constant 1 : i32
    %3 = arith.muli %arg1, %c1_i32 : i32
    %4 = arith.addi %3, %arg2 : i32
    %c384_i32 = arith.constant 384 : i32
    %5 = arith.muli %4, %c384_i32 : i32
    %6 = tpu.iota {dimensions = array<i32: 1>} : vector<1x384xi32>
    %7 = vector.broadcast %5 : i32 to vector<1x384xi32>
    %8 = arith.addi %7, %6 : vector<1x384xi32>
    %c384_i32_1 = arith.constant 384 : i32
    %9 = vector.broadcast %c384_i32_1 : i32 to vector<1x384xi32>
    %10 = arith.cmpi slt, %8, %9 : vector<1x384xi32>
    %c0 = arith.constant 0 : index
    %c0_2 = arith.constant 0 : index
    %11 = vector.load %arg3[%c0, %c0_2] : memref<1x384xi32, #tpu.memory_space<vmem>>, vector<1x384xi32>
    %c-1_i32 = arith.constant -1 : i32
    %12 = vector.broadcast %c-1_i32 : i32 to vector<1x384xi32>
    %13 = arith.select %10, %11, %12 : vector<1x384xi1>, vector<1x384xi32>
    %14 = tpu.iota {dimensions = array<i32: 0>} : vector<384x1xi32>
    %15 = vector.broadcast %5 : i32 to vector<384x1xi32>
    %16 = arith.addi %15, %14 : vector<384x1xi32>
    %c384_i32_3 = arith.constant 384 : i32
    %17 = vector.broadcast %c384_i32_3 : i32 to vector<384x1xi32>
    %18 = arith.cmpi slt, %16, %17 : vector<384x1xi32>
    %c0_4 = arith.constant 0 : index
    %c0_5 = arith.constant 0 : index
    %19 = vector.load %arg4[%c0_4, %c0_5] : memref<384x32xf32, #tpu.memory_space<vmem>>, vector<384x32xf32>
    %c0_i32_6 = arith.constant 0 : i32
    %20 = arith.sitofp %c0_i32_6 : i32 to f32
    %21 = vector.shape_cast %18 : vector<384x1xi1> to vector<384x1xi1>
    %22 = vector.broadcast %21 : vector<384x1xi1> to vector<384x32xi1>
    %23 = vector.broadcast %20 : f32 to vector<384x32xf32>
    %24 = arith.select %22, %19, %23 : vector<384x32xi1>, vector<384x32xf32>
    %c16_i32 = arith.constant 16 : i32
    %25 = arith.muli %arg0, %c16_i32 : i32
    %26 = tpu.iota {dimensions = array<i32: 0>} : vector<16x384xi32>
    %27 = vector.broadcast %25 : i32 to vector<16x384xi32>
    %28 = arith.addi %26, %27 : vector<16x384xi32>
    %29 = vector.broadcast %13 : vector<1x384xi32> to vector<16x384xi32>
    %30 = arith.cmpi eq, %28, %29 : vector<16x384xi32>
    %c0_7 = arith.constant 0 : index
    %c0_8 = arith.constant 0 : index
    %31 = vector.load %arg7[%c0_7, %c0_8] : memref<16x32xf32, #tpu.memory_space<vmem>>, vector<16x32xf32>
    %32 = arith.extui %30 : vector<16x384xi1> to vector<16x384xi32>
    %33 = arith.sitofp %32 : vector<16x384xi32> to vector<16x384xf32>
    %cst = arith.constant dense<0.000000e+00> : vector<16x32xf32>
    %34 = tpu.matmul %33, %24, %cst {dimension_numbers = #tpu.dot_dimension_numbers<[1], [0], [0], [1], [0, 0, 1, 1], [], []>, precision = #tpu.contract_precision<fp32>} : vector<16x384xf32>, vector<384x32xf32>, vector<16x32xf32> -> vector<16x32xf32>
    %35 = arith.addf %31, %34 : vector<16x32xf32>
    %c0_9 = arith.constant 0 : index
    %c0_10 = arith.constant 0 : index
    %36 = vector.load %arg7[%c0_9, %c0_10] : memref<16x32xf32, #tpu.memory_space<vmem>>, vector<16x32xf32>
    tpu.vector_store %arg7[%c0_9, %c0_10], %35 {strides = array<i32>} : memref<16x32xf32, #tpu.memory_space<vmem>>, vector<16x32xf32>,
    %c0_11 = arith.constant 0 : index
    %c0_12 = arith.constant 0 : index
    %37 = vector.load %arg8[%c0_11, %c0_12] : memref<16x1xf32, #tpu.memory_space<vmem>>, vector<16x1xf32>
    %38 = arith.extui %30 : vector<16x384xi1> to vector<16x384xi32>
    %39 = arith.sitofp %38 : vector<16x384xi32> to vector<16x384xf32>
    %cst_13 = arith.constant dense<0.000000e+00> : vector<16xf32>
    %40 = vector.multi_reduction <add>, %39, %cst_13 [1] : vector<16x384xf32> to vector<16xf32>
    %41 = vector.shape_cast %40 : vector<16xf32> to vector<16x1xf32>
    %42 = arith.addf %37, %41 : vector<16x1xf32>
    %c0_14 = arith.constant 0 : index
    %c0_15 = arith.constant 0 : index
    %43 = vector.load %arg8[%c0_14, %c0_15] : memref<16x1xf32, #tpu.memory_space<vmem>>, vector<16x1xf32>
    tpu.vector_store %arg8[%c0_14, %c0_15], %42 {strides = array<i32>} : memref<16x1xf32, #tpu.memory_space<vmem>>, vector<16x1xf32>,
    %c0_i32_16 = arith.constant 0 : i32
    %44 = arith.cmpi eq, %arg2, %c0_i32_16 : i32
    %45 = arith.extui %44 : i1 to i32
    %c0_i32_17 = arith.constant 0 : i32
    %46 = arith.cmpi ne, %45, %c0_i32_17 : i32
    scf.if %46 {
      %c0_18 = arith.constant 0 : index
      %c0_19 = arith.constant 0 : index
      %47 = vector.load %arg7[%c0_18, %c0_19] : memref<16x32xf32, #tpu.memory_space<vmem>>, vector<16x32xf32>
      %c0_20 = arith.constant 0 : index
      %c0_21 = arith.constant 0 : index
      %c0_22 = arith.constant 0 : index
      %48 = vector.load %arg5[%c0_20, %c0_21, %c0_22] : memref<1x16x32xf32, #tpu.memory_space<vmem>>, vector<1x16x32xf32>
      %49 = vector.shape_cast %48 : vector<1x16x32xf32> to vector<16x32xf32>
      %50 = vector.shape_cast %47 : vector<16x32xf32> to vector<1x16x32xf32>
      tpu.vector_store %arg5[%c0_20, %c0_21, %c0_22], %50 {strides = array<i32>} : memref<1x16x32xf32, #tpu.memory_space<vmem>>, vector<1x16x32xf32>,
      %c0_23 = arith.constant 0 : index
      %c0_24 = arith.constant 0 : index
      %51 = vector.load %arg8[%c0_23, %c0_24] : memref<16x1xf32, #tpu.memory_space<vmem>>, vector<16x1xf32>
      %c0_25 = arith.constant 0 : index
      %c0_26 = arith.constant 0 : index
      %c0_27 = arith.constant 0 : index
      %52 = vector.load %arg6[%c0_25, %c0_26, %c0_27] : memref<1x16x1xf32, #tpu.memory_space<vmem>>, vector<1x16x1xf32>
      %53 = vector.shape_cast %52 : vector<1x16x1xf32> to vector<16x1xf32>
      %54 = vector.shape_cast %51 : vector<16x1xf32> to vector<1x16x1xf32>
      tpu.vector_store %arg6[%c0_25, %c0_26, %c0_27], %54 {strides = array<i32>} : memref<1x16x1xf32, #tpu.memory_space<vmem>>, vector<1x16x1xf32>,
    } else {
    }
    return
  }
  func.func @transform_0(%arg0: i32, %arg1: i32, %arg2: i32) -> (i32, i32) {
    %c1_i32 = arith.constant 1 : i32
    %0 = arith.muli %arg1, %c1_i32 : i32
    %1 = arith.addi %0, %arg2 : i32
    %c0_i32 = arith.constant 0 : i32
    %c0_i32_0 = arith.constant 0 : i32
    return %c0_i32, %1 : i32, i32
  }
  func.func @transform_1(%arg0: i32, %arg1: i32, %arg2: i32) -> (i32, i32) {
    %c1_i32 = arith.constant 1 : i32
    %0 = arith.muli %arg1, %c1_i32 : i32
    %1 = arith.addi %0, %arg2 : i32
    %c0_i32 = arith.constant 0 : i32
    %c0_i32_0 = arith.constant 0 : i32
    return %1, %c0_i32 : i32, i32
  }
  func.func @transform_2(%arg0: i32, %arg1: i32, %arg2: i32) -> (i32, i32, i32) {
    %c0_i32 = arith.constant 0 : i32
    %c0_i32_0 = arith.constant 0 : i32
    return %arg1, %arg0, %c0_i32 : i32, i32, i32
  }
  func.func @transform_3(%arg0: i32, %arg1: i32, %arg2: i32) -> (i32, i32, i32) {
    %c0_i32 = arith.constant 0 : i32
    %c0_i32_0 = arith.constant 0 : i32
    return %arg1, %arg0, %c0_i32 : i32, i32, i32
  }
}

</mosaic_0001>

<bundles_post_ra>
// kernel: tpu_custom_call.1
= control target key start
LH: loop header
LB: loop body
LE: loop exit
PB: predicated region body
PF: predicated region fallthrough
CT: control target
= control target key end

     0   :  { %s4037_s0 = inlined_call_operand.vmem [shape: s32[1,384], index: 0, kind: input, shape index: {}]   ;;  %s4038_s1 = inlined_call_operand.vmem [shape: f32[384,32], index: 1, kind: input, shape index: {}]   ;;  %s4039_s2 = inlined_call_operand.hbm [shape: f32[1,16,32], index: 2, kind: output, shape index: {0}]   ;;  %s4040_s3 = inlined_call_operand.vmem [shape: f32[1,16,1], index: 3, kind: output, shape index: {1}]  }
   0x1   :  { %v270_v0 = vld [vmem:[%s4038_s1 + $0xf8] sm:$0xff]  ;;  %v269_v2 = vld [vmem:[%s4038_s1 + $0xf0] sm:$0xff]  ;;  %v268_v7 = vld [vmem:[%s4038_s1 + $0xe8] sm:$0xff] }
   0x2   :  { %v254_v1 = vld [vmem:[%s4038_s1 + $0x78] sm:$0xff]  ;;  %v2760_v3 = vand.u32 4294901760, %v270_v0  ;;  %v2764_v5 = vand.u32 4294901760, %v269_v2  ;;  %v253_v6 = vld [vmem:[%s4038_s1 + $0x70] sm:$0xff]  ;;  %v252_v8 = vld [vmem:[%s4038_s1 + $0x68] sm:$0xff]  ;;  %v2777_v10 = vand.u32 4294901760, %v268_v7 }
   0x3   :  { %v2762_v4 = vand.u32 4294901760, %v254_v1  ;;  %v2775_v9 = vand.u32 4294901760, %v253_v6  ;;  %v2779_v11 = vand.u32 4294901760, %v252_v8  ;;  %v267_v12 = vld [vmem:[%s4038_s1 + $0xe0] sm:$0xff]  ;;  %v2790_v14 = vld [vmem:[%s4038_s1 + $0xd8] sm:$0xff]  ;;  %v2811_v21 = vld [vmem:[%s4038_s1 + $0xd0] sm:$0xff] }
   0x4   :  { %v251_v13 = vld [vmem:[%s4038_s1 + $0x60] sm:$0xff]  ;;  %2153 = vmatprep.subr.mxu0 %v2760_v3  ;;  %v2793_v16 = vand.u32 4294901760, %v267_v12  ;;  %v2798_v18 = vand.u32 4294901760, %v2790_v14  ;;  %v2801_v19 = vsub.f32 %v270_v0, %v2760_v3  ;;  %v2806_v20 = vld [vmem:[%s4038_s1 + $0x58] sm:$0xff]  ;;  %v2816_v22 = vld [vmem:[%s4038_s1 + $0x50] sm:$0xff]  ;;  %v2826_v25 = vand.u32 4294901760, %v2811_v21 }
   0x5   :  { %v2795_v17 = vand.u32 4294901760, %v251_v13  ;;  %2154 = vmatpush3.msra.mxu0 %v2762_v4  ;;  %v2820_v23 = vand.u32 4294901760, %v2806_v20  ;;  %v2823_v24 = vsub.f32 %v254_v1, %v2762_v4  ;;  %v2829_v26 = vsub.f32 %v269_v2, %v2764_v5  ;;  %v2834_v27 = vld [vmem:[%s4038_s1 + $0xc8] sm:$0xff]  ;;  %v2844_v29 = vld [vmem:[%s4038_s1 + $0xc0] sm:$0xff]  ;;  %v2896_v47 = vld [vmem:[%s4038_s1 + $0xb8] sm:$0xff] }
   0x6   :  { %v2839_v28 = vld [vmem:[%s4038_s1 + $0x48] sm:$0xff]  ;;  %2155 = vmatprep.subr.mxu0 %v2764_v5  ;;  %v4054_v30 = vand.u32 4294901760, %v2801_v19  ;;  %v2849_v31 = vand.u32 4294901760, %v2816_v22  ;;  %v2852_v32 = vsub.f32 %v253_v6, %v2775_v9  ;;  %v2855_v33 = vand.u32 4294901760, %v2834_v27  ;;  %v2869_v38 = vld [vmem:[%s4038_s1 + $0x40] sm:$0xff]  ;;  %v2909_v52 = vld [vmem:[%s4038_s1 + $0x38] sm:$0xff] }
   0x7   :  { %2156 = vmatpush3.msra.mxu0 %v2775_v9  ;;  %v4052_v34 = vand.u32 4294901760, %v2823_v24  ;;  %v4051_v35 = vand.u32 4294901760, %v2829_v26  ;;  %v2861_v36 = vsub.f32 %v268_v7, %v2777_v10  ;;  %v2864_v37 = vand.u32 4294901760, %v2839_v28  ;;  %v2919_v57 = vld [vmem:[%s4038_s1 + $0xb0] sm:$0xff]  ;;  %v2950_v6 = vld [vmem:[%s4038_s1 + $0xa8] sm:$0xff] }
   0x8   :  { %2157 = vmatprep.subr.mxu0 %v2777_v10  ;;  %v710_v39 = vsub.f32 %v2801_v19, %v4054_v30  ;;  %v4049_v40 = vand.u32 4294901760, %v2852_v32  ;;  %v2877_v41 = vsub.f32 %v252_v8, %v2779_v11  ;;  %v2880_v42 = vand.u32 4294901760, %v2844_v29  ;;  %v2934_v62 = vld [vmem:[%s4038_s1 + $0x30] sm:$0xff] }
   0x9   :  { %2158 = vmatpush3.msra.mxu0 %v2779_v11  ;;  %v598_v43 = vsub.f32 %v2823_v24, %v4052_v34  ;;  %v717_v44 = vsub.f32 %v2829_v26, %v4051_v35  ;;  %v4047_v45 = vand.u32 4294901760, %v2861_v36  ;;  %v2891_v46 = vsub.f32 %v267_v12, %v2793_v16 }
   0xa   :  { %4138 = vst [vmem:[#allocation7_spill] sm:$0xff] %v2880_v42  ;;  %2159 = vmatprep.subr.mxu0 %v2793_v16  ;;  %v711_v48 = vand.u32 4294901760, %v710_v39  ;;  %v605_v49 = vsub.f32 %v2852_v32, %v4049_v40  ;;  %v4046_v50 = vand.u32 4294901760, %v2877_v41  ;;  %v2904_v51 = vand.u32 4294901760, %v2869_v38 }
   0xb   :  { %2160 = vmatpush3.msra.mxu0 %v2795_v17  ;;  %v599_v53 = vand.u32 4294901760, %v598_v43  ;;  %v718_v54 = vand.u32 4294901760, %v717_v44  ;;  %v724_v55 = vsub.f32 %v2861_v36, %v4047_v45  ;;  %v4044_v56 = vand.u32 4294901760, %v2891_v46 }
   0xc   :  { %4139 = vst [vmem:[#allocation8_spill] sm:$0xff] %v2904_v51  ;;  %2161 = vmatprep.subr.mxu0 %v2798_v18  ;;  %2191 = vmatprep.subr.mxu1 %v711_v48  ;;  %v606_v58 = vand.u32 4294901760, %v605_v49  ;;  %v612_v59 = vsub.f32 %v2877_v41, %v4046_v50  ;;  %v2926_v60 = vsub.f32 %v251_v13, %v2795_v17  ;;  %v2929_v61 = vand.u32 4294901760, %v2896_v47 }
   0xd   :  { %2162 = vmatpush3.msra.mxu0 %v2820_v23  ;;  %2192 = vmatpush3.msra.mxu1 %v599_v53  ;;  %v725_v63 = vand.u32 4294901760, %v724_v55  ;;  %v731_v0 = vsub.f32 %v2891_v46, %v4044_v56  ;;  %v2942_v1 = vsub.f32 %v2790_v14, %v2798_v18  ;;  %v2945_v2 = vand.u32 4294901760, %v2909_v52  ;;  %v2964_v14 = vld [vmem:[%s4038_s1 + $0x28] sm:$0xff] }
   0xe   :  { %4140 = vst [vmem:[#allocation9_spill] sm:$0xff] %v2929_v61  ;;  %2163 = vmatprep.subr.mxu0 %v2826_v25  ;;  %2193 = vmatprep.subr.mxu1 %v718_v54  ;;  %v613_v7 = vand.u32 4294901760, %v612_v59  ;;  %v4042_v8 = vand.u32 4294901760, %v2926_v60  ;;  %v2956_v12 = vsub.f32 %v2806_v20, %v2820_v23  ;;  %v2959_v13 = vand.u32 4294901760, %v2919_v57 }
   0xf   :  { %4141 = vst [vmem:[#allocation10_spill] sm:$0xff] %v2945_v2  ;;  %2164 = vmatpush3.msra.mxu0 %v2849_v31  ;;  %2194 = vmatpush3.msra.mxu1 %v606_v58  ;;  %v732_v39 = vand.u32 4294901760, %v731_v0  ;;  %v4041_v43 = vand.u32 4294901760, %v2942_v1  ;;  %v2970_v44 = vsub.f32 %v2811_v21, %v2826_v25  ;;  %v2973_v20 = vand.u32 4294901760, %v2934_v62  ;;  %v2990_v21 = vld [vmem:[%s4038_s1 + $0xa0] sm:$0xff] }
  0x10   :  { %4142 = vst [vmem:[#allocation11_spill] sm:$0xff] %v2959_v13  ;;  %2165 = vmatprep.subr.mxu0 %v2855_v33  ;;  %2195 = vmatprep.subr.mxu1 %v725_v63  ;;  %v619_v48 = vsub.f32 %v2926_v60, %v4042_v8  ;;  %v4043_v49 = vand.u32 4294901760, %v2956_v12  ;;  %v2982_v53 = vsub.f32 %v2816_v22, %v2849_v31  ;;  %v2985_v54 = vand.u32 4294901760, %v2950_v6 }
  0x11   :  { %4143 = vst [vmem:[#allocation12_spill] sm:$0xff] %v2973_v20 }
  0x12   :  { %4144 = vst [vmem:[#allocation13_spill] sm:$0xff] %v2985_v54 }
  0x13   :  { %9 = vsyncpa [#allocation5], 0  ;;  %2166 = vmatpush3.msra.mxu0 %v2864_v37  ;;  %2196 = vmatpush3.msra.mxu1 %v613_v7  ;;  %v738_v55 = vsub.f32 %v2942_v1, %v4041_v43  ;;  %v4045_v58 = vand.u32 4294901760, %v2970_v44  ;;  %v2999_v22 = vsub.f32 %v2834_v27, %v2855_v33  ;;  %v3002_v59 = vand.u32 4294901760, %v2964_v14  ;;  %v3016_v27 = vld [vmem:[%s4038_s1 + $0x20] sm:$0xff]  ;;  %v3043_v45 = vld [vmem:[%s4038_s1 + $0x18] sm:$0xff] }
  0x14   :  { %2167 = vmatprep.subr.mxu0 %v2880_v42  ;;  %2197 = vmatprep.subr.mxu1 %v732_v39  ;;  %v620_v63 = vand.u32 4294901760, %v619_v48  ;;  %v626_v0 = vsub.f32 %v2956_v12, %v4043_v49  ;;  %v4048_v7 = vand.u32 4294901760, %v2982_v53  ;;  %v3011_v43 = vsub.f32 %v2839_v28, %v2864_v37  ;;  %v3029_v28 = vld [vmem:[%s4038_s1 + $0x98] sm:$0xff]  ;;  %v3059_v40 = vld [vmem:[%s4038_s1 + $0x90] sm:$0xff]  ;;  %v3086_v30 = vld [vmem:[%s4038_s1 + $0x88] sm:$0xff] }
  0x15   :  { %4145 = vst [vmem:[#allocation14_spill] sm:$0xff] %v3002_v59  ;;  %2168 = vmatpush3.msra.mxu0 %v2904_v51  ;;  %v739_v8 = vand.u32 4294901760, %v738_v55  ;;  %v745_v39 = vsub.f32 %v2970_v44, %v4045_v58  ;;  %v4050_v48 = vand.u32 4294901760, %v2999_v22  ;;  %v3024_v49 = vand.u32 4294901760, %v2990_v21 }
  0x16   :  { %2198 = vmatpush3.msra.mxu1 %v620_v63  ;;  %2169 = vmatprep.subr.mxu0 %v2929_v61  ;;  %v627_v56 = vand.u32 4294901760, %v626_v0  ;;  %v633_v55 = vsub.f32 %v2982_v53, %v4048_v7  ;;  %v4053_v58 = vand.u32 4294901760, %v3011_v43  ;;  %v3038_v50 = vsub.f32 %v2844_v29, %v2880_v42 }
  0x17   :  { %4146 = vst [vmem:[#allocation15_spill] sm:$0xff] %v3024_v49  ;;  %2199 = vmatprep.subr.mxu1 %v739_v8  ;;  %2170 = vmatpush3.msra.mxu0 %v2945_v2  ;;  %v746_v63 = vand.u32 4294901760, %v745_v39  ;;  %v752_v0 = vsub.f32 %v2999_v22, %v4050_v48  ;;  %v3050_v7 = vand.u32 4294901760, %v3016_v27  ;;  %v3054_v29 = vsub.f32 %v2869_v38, %v2904_v51  ;;  %v3072_v38 = vld [vmem:[%s4038_s1 + $0x10] sm:$0xff] }
  0x18   :  { %2200 = vmatpush3.msra.mxu1 %v627_v56  ;;  %2171 = vmatprep.subr.mxu0 %v2959_v13  ;;  %v634_v8 = vand.u32 4294901760, %v633_v55  ;;  %v640_v39 = vsub.f32 %v3011_v43, %v4053_v58  ;;  %v4057_v48 = vand.u32 4294901760, %v3038_v50  ;;  %v3067_v35 = vand.u32 4294901760, %v3029_v28 }
  0x19   :  { %4147 = vst [vmem:[#allocation16_spill] sm:$0xff] %v3050_v7  ;;  %2201 = vmatprep.subr.mxu1 %v746_v63  ;;  %2172 = vmatpush3.msra.mxu0 %v2973_v20  ;;  %v753_v56 = vand.u32 4294901760, %v752_v0  ;;  %v4058_v55 = vand.u32 4294901760, %v3054_v29  ;;  %v3078_v34 = vsub.f32 %v2896_v47, %v2929_v61  ;;  %v3081_v58 = vand.u32 4294901760, %v3043_v45 }
  0x1a   :  { %4148 = vst [vmem:[#allocation17_spill] sm:$0xff] %v3067_v35  ;;  %2202 = vmatpush3.msra.mxu1 %v634_v8  ;;  %2173 = vmatprep.subr.mxu0 %v2985_v54  ;;  %v641_v63 = vand.u32 4294901760, %v640_v39  ;;  %v759_v0 = vsub.f32 %v3038_v50, %v4057_v48  ;;  %v3094_v47 = vsub.f32 %v2909_v52, %v2945_v2  ;;  %v3097_v15 = vand.u32 4294901760, %v3059_v40  ;;  %v3114_v52 = vld [vmem:[%s4038_s1 + $0x8] sm:$0xff] }
  0x1b   :  { %4149 = vst [vmem:[#allocation18_spill] sm:$0xff] %v3081_v58  ;;  %2203 = vmatprep.subr.mxu1 %v753_v56  ;;  %2174 = vmatpush3.msra.mxu0 %v3002_v59  ;;  %v647_v8 = vsub.f32 %v3054_v29, %v4058_v55  ;;  %v3106_v61 = vsub.f32 %v2919_v57, %v2959_v13  ;;  %v3109_v48 = vand.u32 4294901760, %v3072_v38  ;;  %v3123_v57 = vand.u32 4294901760, %v3086_v30  ;;  %v3128_v13 = vld [vmem:[%s4038_s1 + $0x80] sm:$0xff] }
  0x1c   :  { %4150 = vst [vmem:[#allocation19_spill] sm:$0xff] %v3094_v47  ;;  %4151 = vst [vmem:[#allocation20_spill] sm:$0xff] %v3097_v15  ;;  %2204 = vmatpush3.msra.mxu1 %v641_v63  ;;  %2175 = vmatprep.subr.mxu0 %v3024_v49  ;;  %v760_v56 = vand.u32 4294901760, %v759_v0  ;;  %v3120_v39 = vsub.f32 %v2934_v62, %v2973_v20  ;;  %v4156_v2 = vand.u32 4294901760, %v3078_v34  ;;  %v4157_v20 = vand.u32 4294901760, %v3094_v47 }
  0x1d   :  { %4152 = vst [vmem:[#allocation21_spill] sm:$0xff] %v3106_v61  ;;  %4153 = vst [vmem:[#allocation22_spill] sm:$0xff] %v3109_v48  ;;  %2176 = vmatpush3.msra.mxu0 %v3050_v7  ;;  %v648_v63 = vand.u32 4294901760, %v647_v8  ;;  %v4075_v55 = vand.u32 4294901760, %v3106_v61  ;;  %v3137_v62 = vsub.f32 %v2950_v6, %v2985_v54  ;;  %v3145_v8 = vand.u32 4294901760, %v3114_v52  ;;  %v3154_v6 = vld [vmem:[%s4038_s1] sm:$0xff] }
  0x1e   :  { %4154 = vst [vmem:[#allocation23_spill] sm:$0xff] %v3120_v39  ;;  %4155 = vst [vmem:[#allocation24_spill] sm:$0xff] %v3123_v57  ;;  %v766_v0 = vsub.f32 %v3078_v34, %v4156_v2  ;;  %2205 = vmatprep.subr.mxu1 %v760_v56  ;;  %2177 = vmatprep.subr.mxu0 %v3067_v35  ;;  %v654_v51 = vsub.f32 %v3094_v47, %v4157_v20  ;;  %v3162_v54 = vand.u32 4294901760, %v3128_v13  ;;  %vm62_vm6 = vcmask 7168  }
  0x1f   :  { %4158 = vst [vmem:[#allocation25_spill] sm:$0xff] %v3145_v8  ;;  %v3149_v2 = vsub.f32 %v2964_v14, %v3002_v59  ;;  %2206 = vmatpush3.msra.mxu1 %v648_v63  ;;  %2178 = vmatpush3.msra.mxu0 %v3081_v58  ;;  %v773_v20 = vsub.f32 %v3106_v61, %v4075_v55  ;;  %v4082_v42 = vand.u32 4294901760, %v3137_v62  ;;  %v4160_v59 = vand.u32 4294901760, %v3120_v39 }
  0x20   :  { %v767_v56 = vand.u32 4294901760, %v766_v0  ;;  %4159 = vst [vmem:[#allocation26_spill] sm:$0xff] %v3162_v54  ;;  %v655_v14 = vand.u32 4294901760, %v654_v51  ;;  %2179 = vmatprep.subr.mxu0 %v3097_v15  ;;  %v3171_v0 = vsub.f32 %v2990_v21, %v3024_v49  ;;  %v3178_v61 = vand.u32 4294901760, %v3154_v6 }
  0x21   :  { %v661_v47 = vsub.f32 %v3120_v39, %v4160_v59  ;;  %v774_v55 = vand.u32 4294901760, %v773_v20  ;;  %2180 = vmatpush3.msra.mxu0 %v3109_v48  ;;  %v780_v51 = vsub.f32 %v3137_v62, %v4082_v42  ;;  %v3182_v59 = vsub.f32 %v3016_v27, %v3050_v7 }
  0x22   :  { %2207 = vmatprep.subr.mxu1 %v767_v56  ;;  %4161 = vst [vmem:[#allocation27_spill] sm:$0xff] %v3178_v61  ;;  %2181 = vmatprep.subr.mxu0 %v3123_v57  ;;  %v4162_v21 = vand.u32 4294901760, %v3149_v2  ;;  %v4085_v20 = vand.u32 4294901760, %v3171_v0  ;;  %v4163_v49 = vlaneseq  ;;  %vm59_vm7 = vcmask 261120  }
  0x23   :  { %2208 = vmatpush3.msra.mxu1 %v655_v14  ;;  %v662_v63 = vand.u32 4294901760, %v661_v47  ;;  %v781_v42 = vand.u32 4294901760, %v780_v51  ;;  %2182 = vmatpush3.msra.mxu0 %v3145_v8  ;;  %v3197_v47 = vld [vmem:[%s4037_s0] sm:$0x7]  ;;  %v3201_v14 = vsub.f32 %v3029_v28, %v3067_v35  ;;  %v4165_v28 = vand.u32 4294901760, %v3182_v59 }
  0x24   :  { %v668_v56 = vsub.f32 %v3149_v2, %v4162_v21  ;;  %v3190_v39 = vshrl.u32 %v4163_v49, 7  ;;  %2209 = vmatprep.subr.mxu1 %v774_v55  ;;  %v3205_v21 = vsub.f32 %v3043_v45, %v3081_v58  ;;  %2183 = vmatprep.subr.mxu0 %v3162_v54  ;;  %v787_v55 = vsub.f32 %v3171_v0, %v4085_v20 }
  0x25   :  { %2210 = vmatpush3.msra.mxu1 %v662_v63  ;;  %2184 = vmatpush3.msra.mxu0 %v3178_v61  ;;  %v675_v45 = vsub.f32 %v3182_v59, %v4165_v28  ;;  %v3223_v58 = vsub.f32 %v3059_v40, %v3097_v15  ;;  %v3231_v28 = vsub.f32 %v3072_v38, %v3109_v48 }
  0x26   :  { %4164 = vst [vmem:[#allocation28_spill] sm:$0xff] %v3190_v39  ;;  %v669_v49 = vand.u32 4294901760, %v668_v56  ;;  %v3212_v51 = vsub.s32 0, %v3190_v39  ;;  %v85_v27 = vsub.s32 1, %v3190_v39  ;;  %2211 = vmatprep.subr.mxu1 %v781_v42  ;;  %v788_v20 = vand.u32 4294901760, %v787_v55  ;;  %2229 = vmatprep.subr.mxu0 %v2801_v19 }
  0x27   :  { %v676_v63 = vand.u32 4294901760, %v675_v45  ;;  %v4166_v56 = vand.u32 4294901760, %v3201_v14  ;;  %v4167_v40 = vand.u32 4294901760, %v3205_v21  ;;  %v4094_v38 = vand.u32 4294901760, %v3231_v28 }
  0x28   :  { %2212 = vmatpush3.msra.mxu1 %v669_v49  ;;  %v86_v35 = vrot.slane %v3197_v47, %v85_v27  ;;  %v82_v42 = vrot.slane %v3197_v47, %v3212_v51  ;;  %v4095_v27 = vand.u32 4294901760, %v3223_v58  ;;  %v3249_v45 = vsub.f32 %v3086_v30, %v3123_v57 }
  0x29   :  { %v794_v7 = vsub.f32 %v3201_v14, %v4166_v56  ;;  %v682_v49 = vsub.f32 %v3205_v21, %v4167_v40  ;;  %2213 = vmatprep.subr.mxu1 %v788_v20  ;;  %v689_v30 = vsub.f32 %v3231_v28, %v4094_v38  ;;  %v4096_v20 = vmov 0.0  }
  0x2a   :  { %v3241_v55 = vrot.slane %v86_v35, %v3212_v51  ;;  %v3244_v15 = vrot.slane %v82_v42, %v3212_v51  ;;  %2214 = vmatpush3.msra.mxu1 %v676_v63  ;;  %v801_v40 = vsub.f32 %v3223_v58, %v4095_v27  ;;  %v3256_v35 = vsub.f32 %v3114_v52, %v3145_v8 }
  0x2b   :  { %v795_v56 = vand.u32 4294901760, %v794_v7  ;;  %v683_v48 = vand.u32 4294901760, %v682_v49  ;;  %v4104_v7 = vand.u32 4294901760, %v3249_v45  ;;  %v4100_v38 = vmov 1.0  }
  0x2c   :  { %4168 = vst [vmem:[#allocation29_spill] sm:$0xff] %v3241_v55  ;;  %vm448_vm0 = vcmp.eq.s32.totalorder %v3190_v39, %v3241_v55  ;;  %vm447_vm1 = vcmp.eq.s32.totalorder %v3190_v39, %v3244_v15  ;;  %v802_v42 = vand.u32 4294901760, %v801_v40  ;;  %v4107_v49 = vand.u32 4294901760, %v3256_v35 }
  0x2d   :  { %v3270_v63 = vsel %vm448_vm0, 1.0, %v4096_v20  ;;  %2215 = vmatprep.subr.mxu1 %v795_v56  ;;  %v3276_v52 = vsel %vm447_vm1, 1.0, %v4096_v20  ;;  %2135 = vmatprep.mubr.msk.f32.mxu1 %vm448_vm0, %v4100_v38  ;;  %v690_v20 = vand.u32 4294901760, %v689_v30  ;;  %v808_v40 = vsub.f32 %v3249_v45, %v4104_v7 }
  0x2e   :  { %4169 = vst [vmem:[#allocation30_spill] sm:$0xff] %v3270_v63  ;;  %4170 = vst [vmem:[#allocation31_spill] sm:$0xff] %v3276_v52  ;;  %v3285_v27 = vsub.f32 %v3270_v63, %v3270_v63  ;;  %v3289_v56 = vsub.f32 %v3276_v52, %v3276_v52  ;;  %2216 = vmatpush3.msra.mxu1 %v683_v48  ;;  %v696_v8 = vsub.f32 %v3256_v35, %v4107_v49 }
  0x2f   :  { %2217 = vmatprep.subr.mxu1 %v802_v42  ;;  %v3299_v38 = vsub.f32 %v3128_v13, %v3162_v54  ;;  %v3303_v63 = vsub.f32 %v3154_v6, %v3178_v61  ;;  %v809_v52 = vand.u32 4294901760, %v808_v40  ;;  %v3322_v40 = vadd.s32 8, %v3190_v39 }
  0x30   :  { %v4110_v48 = vand.u32 4294901760, %v3285_v27  ;;  %v4115_v30 = vand.u32 4294901760, %v3289_v56  ;;  %2218 = vmatpush3.msra.mxu1 %v690_v20  ;;  %v697_v7 = vand.u32 4294901760, %v696_v8 }
  0x31   :  { %4171 = vst [vmem:[#allocation32_spill] sm:$0xff] %v3299_v38  ;;  %4172 = vst [vmem:[#allocation33_spill] sm:$0xff] %v3303_v63  ;;  %v4114_v42 = vand.u32 4294901760, %v3299_v38  ;;  %v4113_v57 = vand.u32 4294901760, %v3303_v63  ;;  %2219 = vmatprep.subr.mxu1 %v809_v52  ;;  %vm451_vm2 = vcmp.eq.s32.totalorder %v3322_v40, %v3241_v55  ;;  %vm450_vm3 = vcmp.eq.s32.totalorder %v3322_v40, %v3244_v15 }
  0x32   :  { %v566_v13 = vsub.f32 %v3285_v27, %v4110_v48  ;;  %v572_v6 = vsub.f32 %v3289_v56, %v4115_v30  ;;  %2220 = vmatpush3.msra.mxu1 %v697_v7  ;;  %4173 = vst [vmem:[#allocation34_spill] sm:$0xff] %v3322_v40  ;;  %v4174_v7 = vmov 1.0   ;;  %v4196_v55 = vand.u32 4294901760, %v2829_v26 }
  0x33   :  { %v815_v20 = vsub.f32 %v3299_v38, %v4114_v42  ;;  %v703_v8 = vsub.f32 %v3303_v63, %v4113_v57 }
  0x34   :  { %v567_v49 = vand.u32 4294901760, %v566_v13  ;;  %v573_v61 = vand.u32 4294901760, %v572_v6 }
  0x35   :  { %v816_v48 = vand.u32 4294901760, %v815_v20  ;;  %v704_v54 = vand.u32 4294901760, %v703_v8  ;;  %v89_v20 = vsub.s32 2, %v3190_v39 }
  0x36   :  { %568 = vmatprep.mubr.f32.mxu0 %v567_v49 }
  0x37   :  { %574 = vmatmul.mubr.f32.vlgmr.msra.gmra.mxu0 %v573_v61  ;;  %2221 = vmatprep.subr.mxu1 %v816_v48  ;;  %v4175_v61 = vmov 0.0   ;;  %v90_v57 = vrot.slane %v3197_v47, %v89_v20  ;;  %v4181_v47 = vld [vmem:[#allocation21_spill] sm:$0xff]  ;;  %v4182_v20 = vld [vmem:[#allocation8_spill] sm:$0xff] }
  0x38   :  { %2230 = vmatpush3.msra.mxu0 %v2823_v24  ;;  %2222 = vmatpush3.msra.mxu1 %v704_v54  ;;  %v3340_v52 = vsel %vm451_vm2, 1.0, %v4175_v61  ;;  %v3350_v54 = vsel %vm450_vm3, 1.0, %v4175_v61  ;;  %v4183_v61 = vld [vmem:[#allocation23_spill] sm:$0xff] }
  0x39   :  { %2231 = vmatprep.subr.mxu0 %v2829_v26  ;;  %2136 = vmatmul.mubr.msk.f32.vlgmr.msra.gmra.mxu1 %vm447_vm1, %v4174_v7  ;;  %4176 = vst [vmem:[#allocation35_spill] sm:$0xff] %v3340_v52  ;;  %4177 = vst [vmem:[#allocation36_spill] sm:$0xff] %v3350_v54  ;;  %v3356_v49 = vsub.f32 %v3340_v52, %v3340_v52  ;;  %v3364_v48 = vsub.f32 %v3350_v54, %v3350_v54  ;;  %v4179_v52 = vld [vmem:[#allocation19_spill] sm:$0xff]  ;;  %v4203_v26 = vand.u32 4294901760, %v2877_v41 }
  0x3a   :  { %2232 = vmatpush3.msra.mxu0 %v2852_v32  ;;  %2267 = vmatprep.subr.mxu1 %v2760_v3  ;;  %v3393_v30 = vrot.slane %v90_v57, %v3212_v51  ;;  %v4185_v57 = vld [vmem:[#allocation10_spill] sm:$0xff] }
  0x3b   :  { %2233 = vmatprep.subr.mxu0 %v2861_v36  ;;  %2268 = vmatpush3.msra.mxu1 %v2762_v4  ;;  %v4117_v13 = vand.u32 4294901760, %v3356_v49  ;;  %v4120_v6 = vand.u32 4294901760, %v3364_v48 }
  0x3c   :  { %2234 = vmatpush3.msra.mxu0 %v2877_v41  ;;  %2269 = vmatprep.subr.mxu1 %v2764_v5  ;;  %4178 = vst [vmem:[#allocation37_spill] sm:$0xff] %v3393_v30  ;;  %vm449_vm4 = vcmp.eq.s32.totalorder %v3190_v39, %v3393_v30  ;;  %vm452_vm5 = vcmp.eq.s32.totalorder %v3322_v40, %v3393_v30  ;;  %v4188_v30 = vld [vmem:[#allocation13_spill] sm:$0xff]  ;;  %v4190_v39 = vld [vmem:[#allocation15_spill] sm:$0xff]  ;;  %v4205_v40 = vand.u32 4294901760, %v2891_v46  ;;  %v4211_v41 = vand.u32 4294901760, %v2956_v12 }
  0x3d   :  { %2235 = vmatprep.subr.mxu0 %v2891_v46  ;;  %2270 = vmatpush3.msra.mxu1 %v2775_v9  ;;  %v581_v8 = vsub.f32 %v3356_v49, %v4117_v13  ;;  %v587_v42 = vsub.f32 %v3364_v48, %v4120_v6  ;;  %v4180_v13 = vld [vmem:[#allocation7_spill] sm:$0xff]  ;;  %v4184_v6 = vld [vmem:[#allocation9_spill] sm:$0xff]  ;;  %v4212_v46 = vand.u32 4294901760, %v2970_v44 }
  0x3e   :  { %2236 = vmatpush3.msra.mxu0 %v2926_v60  ;;  %2271 = vmatprep.subr.mxu1 %v2777_v10 }
  0x3f   :  { %2237 = vmatprep.subr.mxu0 %v2942_v1  ;;  %2272 = vmatpush3.msra.mxu1 %v2779_v11  ;;  %v582_v54 = vand.u32 4294901760, %v581_v8  ;;  %v588_v51 = vand.u32 4294901760, %v587_v42  ;;  %v4187_v8 = vld [vmem:[#allocation12_spill] sm:$0xff]  ;;  %v4189_v42 = vld [vmem:[#allocation14_spill] sm:$0xff] }
  0x40   :  { %2238 = vmatpush3.msra.mxu0 %v2956_v12  ;;  %2273 = vmatprep.subr.mxu1 %v2793_v16  ;;  %v4220_v12 = vand.u32 4294901760, %v3078_v34 }
  0x41   :  { %2239 = vmatprep.subr.mxu0 %v2970_v44  ;;  %2274 = vmatpush3.msra.mxu1 %v2795_v17  ;;  %v4231_v44 = vand.u32 4294901760, %v3223_v58 }
  0x42   :  { %2240 = vmatpush3.msra.mxu0 %v2982_v53  ;;  %2275 = vmatprep.subr.mxu1 %v2798_v18 }
  0x43   :  { %2241 = vmatprep.subr.mxu0 %v2999_v22  ;;  %2276 = vmatpush3.msra.mxu1 %v2820_v23 }
  0x44   :  { %2242 = vmatpush3.msra.mxu0 %v3011_v43  ;;  %2277 = vmatprep.subr.mxu1 %v2826_v25 }
  0x45   :  { %2243 = vmatprep.subr.mxu0 %v3038_v50  ;;  %2278 = vmatpush3.msra.mxu1 %v2849_v31 }
  0x46   :  { %2244 = vmatpush3.msra.mxu0 %v3054_v29  ;;  %2279 = vmatprep.subr.mxu1 %v2855_v33 }
  0x47   :  { %2245 = vmatprep.subr.mxu0 %v3078_v34  ;;  %2280 = vmatpush3.msra.mxu1 %v2864_v37  ;;  %v4227_v34 = vld [vmem:[#allocation7_spill] sm:$0xff] }
  0x48   :  { %2246 = vmatpush3.msra.mxu0 %v4179_v52  ;;  %2281 = vmatprep.subr.mxu1 %v4180_v13  ;;  %v4186_v13 = vld [vmem:[#allocation11_spill] sm:$0xff] }
  0x49   :  { %2247 = vmatprep.subr.mxu0 %v4181_v47  ;;  %2282 = vmatpush3.msra.mxu1 %v4182_v20 }
  0x4a   :  { %2248 = vmatpush3.msra.mxu0 %v4183_v61  ;;  %2283 = vmatprep.subr.mxu1 %v4184_v6 }
  0x4b   :  { %2249 = vmatprep.subr.mxu0 %v3137_v62  ;;  %2284 = vmatpush3.msra.mxu1 %v4185_v57 }
  0x4c   :  { %2250 = vmatpush3.msra.mxu0 %v3149_v2  ;;  %2285 = vmatprep.subr.mxu1 %v4186_v13 }
  0x4d   :  { %2251 = vmatprep.subr.mxu0 %v3171_v0  ;;  %583 = vmatprep.mubr.f32.mxu0 %v582_v54  ;;  %v4191_v54 = vld [vmem:[#allocation16_spill] sm:$0xff] }
  0x4e   :  { %2252 = vmatpush3.msra.mxu0 %v3182_v59  ;;  %2286 = vmatpush3.msra.mxu1 %v4187_v8 }
  0x4f   :  { %2253 = vmatprep.subr.mxu0 %v3201_v14  ;;  %589 = vmatmul.mubr.f32.gmra.mxu0 %v588_v51  ;;  %v4192_v51 = vld [vmem:[#allocation17_spill] sm:$0xff] }
  0x50   :  { %2254 = vmatpush3.msra.mxu0 %v3205_v21  ;;  %2287 = vmatprep.subr.mxu1 %v4188_v30 }
  0x51   :  { %2255 = vmatprep.subr.mxu0 %v3223_v58  ;;  %2288 = vmatpush3.msra.mxu1 %v4189_v42  ;;  %v283_v58 = vld [vmem:[%s4038_s1 + $0x160] sm:$0xff] }
  0x52   :  { %2256 = vmatpush3.msra.mxu0 %v3231_v28  ;;  %2289 = vmatprep.subr.mxu1 %v4190_v39  ;;  %v4193_v39 = vand.u32 4294901760, %v2801_v19  ;;  %v4199_v19 = vand.u32 4294901760, %v2852_v32  ;;  %v4207_v32 = vand.u32 4294901760, %v3285_v27 }
  0x53   :  { %2257 = vmatprep.subr.mxu0 %v3249_v45  ;;  %963 = vmatprep.mubr.f32.mxu0 %v3285_v27  ;;  %v4214_v27 = vand.u32 4294901760, %v2982_v53 }
  0x54   :  { %2258 = vmatpush3.msra.mxu0 %v3256_v35  ;;  %2290 = vmatpush3.msra.mxu1 %v4191_v54  ;;  %v4194_v54 = vand.u32 4294901760, %v2823_v24  ;;  %v4201_v24 = vand.u32 4294901760, %v2861_v36  ;;  %v4209_v36 = vand.u32 4294901760, %v3289_v56 }
  0x55   :  { %2259 = vmatprep.subr.mxu0 %v3299_v38  ;;  %2137 = vmatprep.mubr.msk.f32.mxu1 %vm451_vm2, %v4174_v7  ;;  %v4195_v38 = vld [vmem:[#allocation18_spill] sm:$0xff] }
  0x56   :  { %2260 = vmatpush3.msra.mxu0 %v3303_v63  ;;  %2291 = vmatprep.subr.mxu1 %v4192_v51  ;;  %v4197_v63 = vld [vmem:[#allocation20_spill] sm:$0xff]  ;;  %v4198_v51 = vld [vmem:[#allocation22_spill] sm:$0xff] }
  0x57   :  { %966 = vmatmul.mubr.f32.vlgmr.msra.gmra.mxu0 %v3289_v56  ;;  %2305 = vmatprep.subr.mxu0 %v4193_v39  ;;  %v4200_v39 = vld [vmem:[#allocation24_spill] sm:$0xff]  ;;  %v4237_v56 = vld [vmem:[#allocation15_spill] sm:$0xff] }
  0x58   :  { %2138 = vmatmul.mubr.msk.f32.gmra.mxu1 %vm450_vm3, %v4174_v7  ;;  %2306 = vmatpush3.msra.mxu0 %v4194_v54  ;;  %v4202_v54 = vld [vmem:[#allocation25_spill] sm:$0xff] }
  0x59   :  { %2292 = vmatpush3.msra.mxu1 %v4195_v38  ;;  %2307 = vmatprep.subr.mxu0 %v4196_v55  ;;  %v4204_v55 = vld [vmem:[#allocation26_spill] sm:$0xff] }
  0x5a   :  { %2293 = vmatprep.subr.mxu1 %v4197_v63  ;;  %972 = vmatprep.mubr.f32.mxu0 %v3356_v49 }
  0x5b   :  { %2294 = vmatpush3.msra.mxu1 %v4198_v51  ;;  %2308 = vmatpush3.msra.mxu0 %v4199_v19  ;;  %v4206_v51 = vld [vmem:[#allocation27_spill] sm:$0xff]  ;;  %v4208_v19 = vand.u32 4294901760, %v2926_v60  ;;  %v4213_v60 = vand.u32 4294901760, %v3356_v49  ;;  %v4242_v49 = vld [vmem:[#allocation16_spill] sm:$0xff] }
  0x5c   :  { %975 = vmatmul.mubr.f32.gmra.mxu0 %v3364_v48  ;;  %2295 = vmatprep.subr.mxu1 %v4200_v39 }
  0x5d   :  { %2309 = vmatprep.subr.mxu0 %v4201_v24  ;;  %2296 = vmatpush3.msra.mxu1 %v4202_v54  ;;  %v4210_v24 = vand.u32 4294901760, %v2942_v1  ;;  %v4216_v1 = vand.u32 4294901760, %v2999_v22  ;;  %v284_v22 = vld [vmem:[%s4038_s1 + $0x168] sm:$0xff] }
  0x5e   :  { %2310 = vmatpush3.msra.mxu0 %v4203_v26  ;;  %2297 = vmatprep.subr.mxu1 %v4204_v55 }
  0x5f   :  { %2311 = vmatprep.subr.mxu0 %v4205_v40  ;;  %2298 = vmatpush3.msra.mxu1 %v4206_v51 }
  0x60   :  { %1079 = vmatprep.mubr.f32.mxu1 %v4207_v32  ;;  %2312 = vmatpush3.msra.mxu0 %v4208_v19  ;;  %v279_v19 = vld [vmem:[%s4038_s1 + $0x140] sm:$0xff] }
  0x61   :  { %1083 = vmatmul.mubr.f32.vlgmr.msra.gmra.mxu1 %v4209_v36  ;;  %2313 = vmatprep.subr.mxu0 %v4210_v24 }
  0x62   :  { %2343 = vmatprep.subr.mxu1 %v2760_v3  ;;  %2314 = vmatpush3.msra.mxu0 %v4211_v41  ;;  %v4215_v3 = vand.u32 4294901760, %v3364_v48  ;;  %v278_v41 = vld [vmem:[%s4038_s1 + $0x138] sm:$0xff] }
  0x63   :  { %2344 = vmatpush3.msra.mxu1 %v2762_v4  ;;  %2315 = vmatprep.subr.mxu0 %v4212_v46  ;;  %v4217_v4 = vand.u32 4294901760, %v3011_v43 }
  0x64   :  { %2345 = vmatprep.subr.mxu1 %v2764_v5  ;;  %1090 = vmatprep.mubr.f32.mxu1 %v4213_v60  ;;  %v4218_v5 = vand.u32 4294901760, %v3038_v50  ;;  %v4229_v50 = vand.u32 4294901760, %v3201_v14  ;;  %v4235_v14 = vld [vmem:[#allocation32_spill] sm:$0xff] }
  0x65   :  { %2316 = vmatpush3.msra.mxu0 %v4214_v27  ;;  %2346 = vmatpush3.msra.mxu1 %v2775_v9  ;;  %v4219_v9 = vand.u32 4294901760, %v3054_v29  ;;  %v4232_v29 = vand.u32 4294901760, %v3231_v28  ;;  %v282_v28 = vld [vmem:[%s4038_s1 + $0x158] sm:$0xff]  ;;  %v3636_v27 = vand.u32 4294901760, %v279_v19 }
  0x66   :  { %1094 = vmatmul.mubr.f32.gmra.mxu1 %v4215_v3  ;;  %2317 = vmatprep.subr.mxu0 %v4216_v1 }
  0x67   :  { %2347 = vmatprep.subr.mxu1 %v2777_v10  ;;  %2318 = vmatpush3.msra.mxu0 %v4217_v4  ;;  %v4221_v10 = vand.u32 4294901760, %v4179_v52  ;;  %v3646_v4 = vand.u32 4294901760, %v278_v41 }
  0x68   :  { %2348 = vmatpush3.msra.mxu1 %v2779_v11  ;;  %2319 = vmatprep.subr.mxu0 %v4218_v5  ;;  %v4222_v11 = vand.u32 4294901760, %v4181_v47  ;;  %v3584_v47 = vand.u32 4294901760, %v282_v28  ;;  %v277_v5 = vld [vmem:[%s4038_s1 + $0x130] sm:$0xff] }
  0x69   :  { %2349 = vmatprep.subr.mxu1 %v2793_v16  ;;  %2320 = vmatpush3.msra.mxu0 %v4219_v9  ;;  %v4223_v16 = vand.u32 4294901760, %v4183_v61  ;;  %v4264_v61 = vmov 0.0  }
  0x6a   :  { %2350 = vmatpush3.msra.mxu1 %v2795_v17  ;;  %2321 = vmatprep.subr.mxu0 %v4220_v12  ;;  %v4224_v17 = vand.u32 4294901760, %v3137_v62  ;;  %v4233_v62 = vand.u32 4294901760, %v3249_v45  ;;  %v3625_v46 = vsub.f32 %v282_v28, %v3584_v47  ;;  %63 = vst.msk [vmem:[#allocation3] sm:$0xff] %vm62_vm6, %v4264_v61  ;;  %64 = vst.msk [vmem:[#allocation3 + $0x8] sm:$0xff] %vm62_vm6, %v4264_v61 }
  0x6b   :  { %2351 = vmatprep.subr.mxu1 %v2798_v18  ;;  %2322 = vmatpush3.msra.mxu0 %v4221_v10  ;;  %v4225_v18 = vand.u32 4294901760, %v3149_v2  ;;  %61 = vst.msk [vmem:[#allocation2 + $0x8] sm:$0xff] %vm59_vm7, %v4264_v61  ;;  %60 = vst.msk [vmem:[#allocation2] sm:$0xff] %vm59_vm7, %v4264_v61 }
  0x6c   :  { %2352 = vmatpush3.msra.mxu1 %v2820_v23  ;;  %2323 = vmatprep.subr.mxu0 %v4222_v11  ;;  %v286_v23 = vld [vmem:[%s4038_s1 + $0x178] sm:$0xff]  ;;  %v3656_v9 = vand.u32 4294901760, %v3625_v46  ;;  %v3676_v11 = vand.u32 4294901760, %v277_v5 }
  0x6d   :  { %2353 = vmatprep.subr.mxu1 %v2826_v25  ;;  %2324 = vmatpush3.msra.mxu0 %v4223_v16  ;;  %v4226_v25 = vand.u32 4294901760, %v3171_v0  ;;  %v3524_v43 = vand.u32 4294901760, %v286_v23  ;;  %v4234_v0 = vand.u32 4294901760, %v3256_v35  ;;  %v3566_v35 = vand.u32 4294901760, %v283_v58 }
  0x6e   :  { %2354 = vmatpush3.msra.mxu1 %v2849_v31  ;;  %2325 = vmatprep.subr.mxu0 %v4224_v17  ;;  %v4228_v31 = vand.u32 4294901760, %v3182_v59  ;;  %v3552_v59 = vand.u32 4294901760, %v284_v22  ;;  %v275_v17 = vld [vmem:[%s4038_s1 + $0x120] sm:$0xff] }
  0x6f   :  { %2355 = vmatprep.subr.mxu1 %v2855_v33  ;;  %2326 = vmatpush3.msra.mxu0 %v4225_v18  ;;  %v285_v33 = vld [vmem:[%s4038_s1 + $0x170] sm:$0xff]  ;;  %v3547_v2 = vsub.f32 %v286_v23, %v3524_v43  ;;  %v3602_v26 = vsub.f32 %v283_v58, %v3566_v35  ;;  %v3685_v18 = vsub.f32 %v279_v19, %v3636_v27  ;;  %v271_v19 = vld [vmem:[%s4038_s1 + $0x100] sm:$0xff] }
  0x70   :  { %2356 = vmatpush3.msra.mxu1 %v2864_v37  ;;  %2327 = vmatprep.subr.mxu0 %v4226_v25  ;;  %v4230_v37 = vand.u32 4294901760, %v3205_v21  ;;  %v3532_v53 = vand.u32 4294901760, %v285_v33  ;;  %v4236_v21 = vand.u32 4294901760, %v4235_v14  ;;  %v3689_v23 = vsub.f32 %v278_v41, %v3646_v4 }
  0x71   :  { %2357 = vmatprep.subr.mxu1 %v4227_v34  ;;  %2328 = vmatpush3.msra.mxu0 %v4228_v31  ;;  %v3574_v48 = vand.u32 4294901760, %v3547_v2  ;;  %v3639_v3 = vand.u32 4294901760, %v3602_v26  ;;  %v1518_v34 = vsub.f32 %v3625_v46, %v3656_v9  ;;  %v3718_v58 = vsub.f32 %v277_v5, %v3676_v11 }
  0x72   :  { %2358 = vmatpush3.msra.mxu1 %v4182_v20  ;;  %2329 = vmatprep.subr.mxu0 %v4229_v50  ;;  %v3561_v45 = vsub.f32 %v285_v33, %v3532_v53  ;;  %v3587_v20 = vsub.f32 %v284_v22, %v3552_v59  ;;  %v274_v50 = vld [vmem:[%s4038_s1 + $0x118] sm:$0xff]  ;;  %v3728_v14 = vand.u32 4294901760, %v3689_v23 }
  0x73   :  { %2359 = vmatprep.subr.mxu1 %v4184_v6  ;;  %2330 = vmatpush3.msra.mxu0 %v4230_v37  ;;  %v4243_v6 = vld [vmem:[#allocation17_spill] sm:$0xff]  ;;  %v1490_v32 = vsub.f32 %v3547_v2, %v3574_v48  ;;  %v1511_v10 = vsub.f32 %v3602_v26, %v3639_v3  ;;  %v3706_v37 = vand.u32 4294901760, %v275_v17 }
  0x74   :  { %2360 = vmatpush3.msra.mxu1 %v4185_v57  ;;  %2331 = vmatprep.subr.mxu0 %v4231_v44  ;;  %v3592_v57 = vand.u32 4294901760, %v3561_v45  ;;  %v3619_v24 = vand.u32 4294901760, %v3587_v20  ;;  %v1546_v41 = vsub.f32 %v3689_v23, %v3728_v14 }
  0x75   :  { %2361 = vmatprep.subr.mxu1 %v4186_v13  ;;  %2332 = vmatpush3.msra.mxu0 %v4232_v29  ;;  %v281_v13 = vld [vmem:[%s4038_s1 + $0x150] sm:$0xff]  ;;  %v1512_v44 = vand.u32 4294901760, %v1511_v10  ;;  %v3712_v29 = vand.u32 4294901760, %v3685_v18  ;;  %v3787_v10 = vand.u32 4294901760, %v271_v19 }
  0x76   :  { %2362 = vmatpush3.msra.mxu1 %v4187_v8  ;;  %2333 = vmatprep.subr.mxu0 %v4233_v62  ;;  %v280_v8 = vld [vmem:[%s4038_s1 + $0x148] sm:$0xff]  ;;  %v1497_v60 = vsub.f32 %v3561_v45, %v3592_v57  ;;  %v273_v62 = vld [vmem:[%s4038_s1 + $0x110] sm:$0xff] }
  0x77   :  { %2363 = vmatprep.subr.mxu1 %v4188_v30  ;;  %2334 = vmatpush3.msra.mxu0 %v4234_v0  ;;  %v4238_v30 = vld [vmem:[#allocation33_spill] sm:$0xff]  ;;  %v3616_v36 = vand.u32 4294901760, %v280_v8  ;;  %v3725_v0 = vand.u32 4294901760, %v274_v50 }
  0x78   :  { %2364 = vmatpush3.msra.mxu1 %v4189_v42  ;;  %2335 = vmatprep.subr.mxu0 %v4236_v21  ;;  %v4239_v40 = vand.u32 4294901760, %v4238_v30  ;;  %v3599_v42 = vand.u32 4294901760, %v281_v13  ;;  %v1519_v21 = vand.u32 4294901760, %v1518_v34  ;;  %v4246_v30 = vmov 0.0  }
  0x79   :  { %2365 = vmatprep.subr.mxu1 %v4237_v56  ;;  %2139 = vmatprep.mubr.msk.f32.mxu0 %vm448_vm0, %v4174_v7  ;;  %v3659_v12 = vsub.f32 %v280_v8, %v3616_v36  ;;  %v272_v56 = vld [vmem:[%s4038_s1 + $0x108] sm:$0xff]  ;;  %v3743_v52 = vsel %vm449_vm4, 1.0, %v4246_v30  ;;  %v1539_v8 = vsub.f32 %v3685_v18, %v3712_v29 }
  0x7a   :  { %2336 = vmatpush3.msra.mxu0 %v4239_v40  ;;  %2366 = vmatpush3.msra.mxu1 %v4242_v49  ;;  %v3642_v1 = vsub.f32 %v281_v13, %v3599_v42  ;;  %4248 = vst [vmem:[#allocation19_spill] sm:$0xff] %v3743_v52  ;;  %v3746_v49 = vand.u32 4294901760, %v273_v62  ;;  %v3752_v13 = vsel %vm452_vm5, 1.0, %v4246_v30 }
  0x7b   :  { %2140 = vmatmul.mubr.msk.f32.vlgmr.msra.gmra.mxu0 %vm447_vm1, %v4174_v7  ;;  %2367 = vmatprep.subr.mxu1 %v4243_v6  ;;  %v3697_v33 = vand.u32 4294901760, %v3659_v12  ;;  %4249 = vst [vmem:[#allocation21_spill] sm:$0xff] %v3752_v13 }
  0x7c   :  { %2489 = vmatprep.subr.mxu0 %v3524_v43  ;;  %2368 = vmatpush3.msra.mxu1 %v4195_v38  ;;  %v3679_v16 = vand.u32 4294901760, %v3642_v1  ;;  %v2075_v38 = vld [vmem:[#allocation3 + $0x8] sm:$0xff] }
  0x7d   :  { %2490 = vmatpush3.msra.mxu0 %v3524_v43  ;;  %2369 = vmatprep.subr.mxu1 %v4197_v63  ;;  %v4245_v63 = vld [vmem:[#allocation22_spill] sm:$0xff]  ;;  %v1532_v28 = vsub.f32 %v3659_v12, %v3697_v33 }
  0x7e   :  { %2491 = vmatprep.subr.mxu0 %v3532_v53  ;;  %2141 = vmatprep.mubr.msk.f32.mxu0 %vm451_vm2, %v4174_v7  ;;  %v1525_v22 = vsub.f32 %v3642_v1, %v3679_v16 }
  0x7f   :  { %2370 = vmatpush3.msra.mxu1 %v4245_v63  ;;  %2492 = vmatpush3.msra.mxu0 %v3532_v53  ;;  %v3764_v63 = vsub.f32 %v275_v17, %v3706_v37  ;;  %v1533_v5 = vand.u32 4294901760, %v1532_v28  ;;  %v1540_v17 = vand.u32 4294901760, %v1539_v8  ;;  %v3818_v28 = vsub.f32 %v271_v19, %v3787_v10 }
  0x80   :  { %2142 = vmatmul.mubr.msk.f32.gmra.mxu0 %vm450_vm3, %v4174_v7  ;;  %2371 = vmatprep.subr.mxu1 %v4200_v39  ;;  %v1491_v39 = vand.u32 4294901760, %v1490_v32  ;;  %v1526_v6 = vand.u32 4294901760, %v1525_v22  ;;  %v3758_v32 = vand.u32 4294901760, %v3718_v58 }
  0x81   :  { %2493 = vmatprep.subr.mxu0 %v3552_v59  ;;  %2372 = vmatpush3.msra.mxu1 %v4202_v54  ;;  %v1504_v54 = vsub.f32 %v3587_v20, %v3619_v24  ;;  %v3793_v34 = vand.u32 4294901760, %v3764_v63 }
  0x82   :  { %2494 = vmatpush3.msra.mxu0 %v3552_v59  ;;  %2373 = vmatprep.subr.mxu1 %v4204_v55  ;;  %v1498_v55 = vand.u32 4294901760, %v1497_v60  ;;  %v3769_v60 = vand.u32 4294901760, %v272_v56 }
  0x83   :  { %2495 = vmatprep.subr.mxu0 %v3566_v35  ;;  %2374 = vmatpush3.msra.mxu1 %v4206_v51  ;;  %v276_v51 = vld [vmem:[%s4038_s1 + $0x128] sm:$0xff]  ;;  %v1505_v25 = vand.u32 4294901760, %v1504_v54  ;;  %4250 = vst [vmem:[#allocation8_spill] sm:$0xff] %v3793_v34 }
  0x84   :  { %2143 = vmatprep.mubr.msk.f32.mxu1 %vm448_vm0, %v4174_v7  ;;  %2496 = vmatpush3.msra.mxu0 %v3566_v35  ;;  %v3694_v31 = vand.u32 4294901760, %v276_v51 }
  0x85   :  { %2144 = vmatmul.mubr.msk.f32.vlgmr.msra.gmra.mxu1 %vm447_vm1, %v4174_v7  ;;  %2497 = vmatprep.subr.mxu0 %v3584_v47 }
  0x86   :  { %2524 = vmatprep.subr.mxu1 %v1491_v39  ;;  %2498 = vmatpush3.msra.mxu0 %v3584_v47  ;;  %v3737_v15 = vsub.f32 %v276_v51, %v3694_v31  ;;  %v3784_v51 = vsub.f32 %v274_v50, %v3725_v0  ;;  %v1547_v50 = vand.u32 4294901760, %v1546_v41  ;;  %v1567_v41 = vsub.f32 %v3764_v63, %v3793_v34 }
  0x87   :  { %2525 = vmatpush3.msra.mxu1 %v1491_v39  ;;  %2499 = vmatprep.subr.mxu0 %v3599_v42  ;;  %v3773_v39 = vsub.f32 %v3743_v52, %v3743_v52 }
  0x88   :  { %2526 = vmatprep.subr.mxu1 %v1498_v55  ;;  %2145 = vmatprep.mubr.msk.f32.mxu1 %vm451_vm2, %v4174_v7  ;;  %v3777_v54 = vand.u32 4294901760, %v3737_v15  ;;  %v3805_v8 = vand.u32 4294901760, %v3784_v51 }
  0x89   :  { %2500 = vmatpush3.msra.mxu0 %v3599_v42  ;;  %2527 = vmatpush3.msra.mxu1 %v1498_v55  ;;  %v3781_v55 = vsub.f32 %v3752_v13, %v3752_v13 }
  0x8a   :  { %2146 = vmatmul.mubr.msk.f32.gmra.mxu1 %vm450_vm3, %v4174_v7  ;;  %2501 = vmatprep.subr.mxu0 %v3616_v36  ;;  %4251 = vst [vmem:[#allocation23_spill] sm:$0xff] %v3805_v8  ;;  %v1574_v52 = vsub.f32 %v3784_v51, %v3805_v8 }
  0x8b   :  { %2528 = vmatprep.subr.mxu1 %v1505_v25  ;;  %2502 = vmatpush3.msra.mxu0 %v3616_v36  ;;  %v4253_v30 = vand.u32 4294901760, %v3781_v55 }
  0x8c   :  { %2529 = vmatpush3.msra.mxu1 %v1505_v25  ;;  %2503 = vmatprep.subr.mxu0 %v3636_v27  ;;  %v1553_v25 = vsub.f32 %v3718_v58, %v3758_v32  ;;  %v1575_v8 = vand.u32 4294901760, %v1574_v52 }
  0x8d   :  { %2530 = vmatprep.subr.mxu1 %v1512_v44  ;;  %2504 = vmatpush3.msra.mxu0 %v3636_v27  ;;  %v1479_v13 = vsub.f32 %v3781_v55, %v4253_v30 }
  0x8e   :  { %2531 = vmatpush3.msra.mxu1 %v1512_v44  ;;  %2505 = vmatprep.subr.mxu0 %v3646_v4  ;;  %v3796_v44 = vsub.f32 %v273_v62, %v3746_v49  ;;  %v3808_v62 = vsub.f32 %v272_v56, %v3769_v60  ;;  %v4252_v56 = vand.u32 4294901760, %v3773_v39 }
  0x8f   :  { %2532 = vmatprep.subr.mxu1 %v1519_v21  ;;  %2506 = vmatpush3.msra.mxu0 %v3646_v4 }
  0x90   :  { %2533 = vmatpush3.msra.mxu1 %v1519_v21  ;;  %2507 = vmatprep.subr.mxu0 %v3676_v11  ;;  %v1560_v21 = vsub.f32 %v3737_v15, %v3777_v54  ;;  %v3815_v22 = vand.u32 4294901760, %v3796_v44  ;;  %v3831_v19 = vand.u32 4294901760, %v3808_v62 }
  0x91   :  { %2534 = vmatprep.subr.mxu1 %v1526_v6  ;;  %2508 = vmatpush3.msra.mxu0 %v3676_v11 }
  0x92   :  { %2535 = vmatpush3.msra.mxu1 %v1526_v6  ;;  %2509 = vmatprep.subr.mxu0 %v3694_v31  ;;  %v1554_v6 = vand.u32 4294901760, %v1553_v25  ;;  %v1561_v25 = vand.u32 4294901760, %v1560_v21  ;;  %v1581_v21 = vsub.f32 %v3796_v44, %v3815_v22  ;;  %v1588_v34 = vsub.f32 %v3808_v62, %v3831_v19 }
  0x93   :  { %2536 = vmatprep.subr.mxu1 %v1533_v5  ;;  %2510 = vmatpush3.msra.mxu0 %v3694_v31 }
  0x94   :  { %2537 = vmatpush3.msra.mxu1 %v1533_v5  ;;  %2511 = vmatprep.subr.mxu0 %v3706_v37  ;;  %v1469_v5 = vsub.f32 %v3773_v39, %v4252_v56  ;;  %v3838_v56 = vand.u32 4294901760, %v3818_v28 }
  0x95   :  { %2538 = vmatprep.subr.mxu1 %v1540_v17  ;;  %2512 = vmatpush3.msra.mxu0 %v3706_v37 }
  0x96   :  { %2539 = vmatpush3.msra.mxu1 %v1540_v17  ;;  %2513 = vmatprep.subr.mxu0 %v3725_v0  ;;  %v1568_v17 = vand.u32 4294901760, %v1567_v41  ;;  %v1470_v30 = vand.u32 4294901760, %v1469_v5  ;;  %v1582_v41 = vand.u32 4294901760, %v1581_v21  ;;  %v1589_v5 = vand.u32 4294901760, %v1588_v34 }
  0x97   :  { %2540 = vmatprep.subr.mxu1 %v1547_v50  ;;  %2514 = vmatpush3.msra.mxu0 %v3725_v0 }
  0x98   :  { %2541 = vmatpush3.msra.mxu1 %v1547_v50  ;;  %2515 = vmatprep.subr.mxu0 %v3746_v49  ;;  %v1480_v50 = vand.u32 4294901760, %v1479_v13 }
  0x99   :  { %2542 = vmatprep.subr.mxu1 %v1554_v6  ;;  %2516 = vmatpush3.msra.mxu0 %v3746_v49 }
  0x9a   :  { %2543 = vmatpush3.msra.mxu1 %v1554_v6  ;;  %2517 = vmatprep.subr.mxu0 %v3769_v60  ;;  %v1595_v6 = vsub.f32 %v3818_v28, %v3838_v56 }
  0x9b   :  { %2544 = vmatprep.subr.mxu1 %v1561_v25  ;;  %2518 = vmatpush3.msra.mxu0 %v3769_v60 }
  0x9c   :  { %2545 = vmatpush3.msra.mxu1 %v1561_v25  ;;  %2519 = vmatprep.subr.mxu0 %v3787_v10  ;;  %v1596_v52 = vand.u32 4294901760, %v1595_v6 }
  0x9d   :  { %2546 = vmatprep.subr.mxu1 %v1568_v17  ;;  %2520 = vmatpush3.msra.mxu0 %v3787_v10 }
  0x9e   :  { %2521 = vmatprep.mubr.f32.mxu0 %v1470_v30  ;;  %2547 = vmatpush3.msra.mxu1 %v1568_v17 }
  0x9f   :  { %2522 = vmatmul.mubr.f32.vlgmr.msra.gmra.mxu0 %v1480_v50  ;;  %2548 = vmatprep.subr.mxu1 %v1575_v8 }
  0xa0   :  { %2559 = vmatprep.subr.mxu0 %v3547_v2  ;;  %2549 = vmatpush3.msra.mxu1 %v1575_v8 }
  0xa1   :  { %2560 = vmatpush3.msra.mxu0 %v3547_v2  ;;  %2550 = vmatprep.subr.mxu1 %v1582_v41  ;;  %v4254_v2 = vand.u32 4294901760, %v3773_v39 }
  0xa2   :  { %2561 = vmatprep.subr.mxu0 %v3561_v45  ;;  %2551 = vmatpush3.msra.mxu1 %v1582_v41 }
  0xa3   :  { %2562 = vmatpush3.msra.mxu0 %v3561_v45  ;;  %2552 = vmatprep.subr.mxu1 %v1589_v5  ;;  %v4255_v45 = vand.u32 4294901760, %v3781_v55 }
  0xa4   :  { %2563 = vmatprep.subr.mxu0 %v3587_v20  ;;  %2553 = vmatpush3.msra.mxu1 %v1589_v5 }
  0xa5   :  { %2564 = vmatpush3.msra.mxu0 %v3587_v20  ;;  %2554 = vmatprep.subr.mxu1 %v1596_v52 }
  0xa6   :  { %2565 = vmatprep.subr.mxu0 %v3602_v26  ;;  %2555 = vmatpush3.msra.mxu1 %v1596_v52 }
  0xa7   :  { %2556 = vmatprep.mubr.msk.f32.mxu1 %vm449_vm4, %v4174_v7  ;;  %2566 = vmatpush3.msra.mxu0 %v3602_v26 }
  0xa8   :  { %2557 = vmatmul.mubr.msk.f32.vlgmr.msra.gmra.mxu1 %vm452_vm5, %v4174_v7  ;;  %2567 = vmatprep.subr.mxu0 %v3625_v46 }
  0xa9   :  { %2594 = vmatprep.subr.mxu1 %v3524_v43  ;;  %2568 = vmatpush3.msra.mxu0 %v3625_v46  ;;  %v2074_v46 = vld [vmem:[#allocation3] sm:$0xff] }
  0xaa   :  { %2595 = vmatpush3.msra.mxu1 %v3524_v43  ;;  %2569 = vmatprep.subr.mxu0 %v3642_v1 }
  0xab   :  { %2596 = vmatprep.subr.mxu1 %v3532_v53  ;;  %2570 = vmatpush3.msra.mxu0 %v3642_v1 }
  0xac   :  { %2597 = vmatpush3.msra.mxu1 %v3532_v53  ;;  %2571 = vmatprep.subr.mxu0 %v3659_v12 }
  0xad   :  { %2598 = vmatprep.subr.mxu1 %v3552_v59  ;;  %2572 = vmatpush3.msra.mxu0 %v3659_v12 }
  0xae   :  { %2599 = vmatpush3.msra.mxu1 %v3552_v59  ;;  %2573 = vmatprep.subr.mxu0 %v3685_v18 }
  0xaf   :  { %2600 = vmatprep.subr.mxu1 %v3566_v35  ;;  %2574 = vmatpush3.msra.mxu0 %v3685_v18 }
  0xb0   :  { %2601 = vmatpush3.msra.mxu1 %v3566_v35  ;;  %2575 = vmatprep.subr.mxu0 %v3689_v23 }
  0xb1   :  { %2602 = vmatprep.subr.mxu1 %v3584_v47  ;;  %2576 = vmatpush3.msra.mxu0 %v3689_v23 }
  0xb2   :  { %2603 = vmatpush3.msra.mxu1 %v3584_v47  ;;  %2577 = vmatprep.subr.mxu0 %v3718_v58 }
  0xb3   :  { %2604 = vmatprep.subr.mxu1 %v3599_v42  ;;  %2578 = vmatpush3.msra.mxu0 %v3718_v58 }
  0xb4   :  { %2605 = vmatpush3.msra.mxu1 %v3599_v42  ;;  %2579 = vmatprep.subr.mxu0 %v3737_v15 }
  0xb5   :  { %2606 = vmatprep.subr.mxu1 %v3616_v36  ;;  %2580 = vmatpush3.msra.mxu0 %v3737_v15 }
  0xb6   :  { %2607 = vmatpush3.msra.mxu1 %v3616_v36  ;;  %2581 = vmatprep.subr.mxu0 %v3764_v63 }
  0xb7   :  { %2608 = vmatprep.subr.mxu1 %v3636_v27  ;;  %2582 = vmatpush3.msra.mxu0 %v3764_v63 }
  0xb8   :  { %2609 = vmatpush3.msra.mxu1 %v3636_v27  ;;  %2583 = vmatprep.subr.mxu0 %v3784_v51 }
  0xb9   :  { %2610 = vmatprep.subr.mxu1 %v3646_v4  ;;  %2584 = vmatpush3.msra.mxu0 %v3784_v51 }
  0xba   :  { %2611 = vmatpush3.msra.mxu1 %v3646_v4  ;;  %2585 = vmatprep.subr.mxu0 %v3796_v44 }
  0xbb   :  { %2612 = vmatprep.subr.mxu1 %v3676_v11  ;;  %2586 = vmatpush3.msra.mxu0 %v3796_v44 }
  0xbc   :  { %2613 = vmatpush3.msra.mxu1 %v3676_v11  ;;  %2587 = vmatprep.subr.mxu0 %v3808_v62 }
  0xbd   :  { %2614 = vmatprep.subr.mxu1 %v3694_v31  ;;  %2588 = vmatpush3.msra.mxu0 %v3808_v62 }
  0xbe   :  { %2615 = vmatpush3.msra.mxu1 %v3694_v31  ;;  %2589 = vmatprep.subr.mxu0 %v3818_v28 }
  0xbf   :  { %2616 = vmatprep.subr.mxu1 %v3706_v37  ;;  %2590 = vmatpush3.msra.mxu0 %v3818_v28 }
  0xc0   :  { %2591 = vmatprep.mubr.f32.mxu0 %v3773_v39  ;;  %2617 = vmatpush3.msra.mxu1 %v3706_v37 }
  0xc1   :  { %2592 = vmatmul.mubr.f32.vlgmr.msra.gmra.mxu0 %v3781_v55  ;;  %2618 = vmatprep.subr.mxu1 %v3725_v0 }
  0xc2   :  { %2629 = vmatprep.subr.mxu0 %v3574_v48  ;;  %2619 = vmatpush3.msra.mxu1 %v3725_v0 }
  0xc3   :  { %2630 = vmatpush3.msra.mxu0 %v3574_v48  ;;  %2620 = vmatprep.subr.mxu1 %v3746_v49 }
  0xc4   :  { %2631 = vmatprep.subr.mxu0 %v3592_v57  ;;  %2621 = vmatpush3.msra.mxu1 %v3746_v49 }
  0xc5   :  { %2632 = vmatpush3.msra.mxu0 %v3592_v57  ;;  %2622 = vmatprep.subr.mxu1 %v3769_v60  ;;  %v4261_v57 = vld [vmem:[#allocation36_spill] sm:$0xff] }
  0xc6   :  { %2633 = vmatprep.subr.mxu0 %v3619_v24  ;;  %2623 = vmatpush3.msra.mxu1 %v3769_v60 }
  0xc7   :  { %2634 = vmatpush3.msra.mxu0 %v3619_v24  ;;  %2624 = vmatprep.subr.mxu1 %v3787_v10 }
  0xc8   :  { %2635 = vmatprep.subr.mxu0 %v3639_v3  ;;  %2625 = vmatpush3.msra.mxu1 %v3787_v10 }
  0xc9   :  { %2626 = vmatprep.mubr.f32.mxu1 %v4254_v2  ;;  %2636 = vmatpush3.msra.mxu0 %v3639_v3 }
  0xca   :  { %2627 = vmatmul.mubr.f32.vlgmr.msra.gmra.mxu1 %v4255_v45  ;;  %2637 = vmatprep.subr.mxu0 %v3656_v9 }
  0xcb   :  { %2664 = vmatprep.subr.mxu1 %v3524_v43  ;;  %2638 = vmatpush3.msra.mxu0 %v3656_v9 }
  0xcc   :  { %2665 = vmatpush3.msra.mxu1 %v3524_v43  ;;  %2639 = vmatprep.subr.mxu0 %v3679_v16  ;;  %v4256_v43 = vld [vmem:[#allocation8_spill] sm:$0xff] }
  0xcd   :  { %2666 = vmatprep.subr.mxu1 %v3532_v53  ;;  %2640 = vmatpush3.msra.mxu0 %v3679_v16 }
  0xce   :  { %2667 = vmatpush3.msra.mxu1 %v3532_v53  ;;  %2641 = vmatprep.subr.mxu0 %v3697_v33  ;;  %v4257_v53 = vld [vmem:[#allocation23_spill] sm:$0xff] }
  0xcf   :  { %2668 = vmatprep.subr.mxu1 %v3552_v59  ;;  %2642 = vmatpush3.msra.mxu0 %v3697_v33 }
  0xd0   :  { %2669 = vmatpush3.msra.mxu1 %v3552_v59  ;;  %2643 = vmatprep.subr.mxu0 %v3712_v29  ;;  %v4258_v59 = vld [vmem:[#allocation31_spill] sm:$0xff] }
  0xd1   :  { %2670 = vmatprep.subr.mxu1 %v3566_v35  ;;  %2644 = vmatpush3.msra.mxu0 %v3712_v29 }
  0xd2   :  { %2671 = vmatpush3.msra.mxu1 %v3566_v35  ;;  %2645 = vmatprep.subr.mxu0 %v3728_v14  ;;  %v4259_v35 = vld [vmem:[#allocation30_spill] sm:$0xff] }
  0xd3   :  { %2672 = vmatprep.subr.mxu1 %v3584_v47  ;;  %2646 = vmatpush3.msra.mxu0 %v3728_v14  ;;  %v2076_v48 = vadd.f32 %v4259_v35, %v4258_v59 }
  0xd4   :  { %2673 = vmatpush3.msra.mxu1 %v3584_v47  ;;  %2647 = vmatprep.subr.mxu0 %v3758_v32  ;;  %v4260_v47 = vld [vmem:[#allocation19_spill] sm:$0xff] }
  0xd5   :  { %2674 = vmatprep.subr.mxu1 %v3599_v42  ;;  %2648 = vmatpush3.msra.mxu0 %v3758_v32  ;;  %v2077_v20 = vadd.f32 %v4260_v47, %v2076_v48 }
  0xd6   :  { %2675 = vmatpush3.msra.mxu1 %v3599_v42  ;;  %2649 = vmatprep.subr.mxu0 %v3777_v54  ;;  %v4262_v42 = vld [vmem:[#allocation35_spill] sm:$0xff] }
  0xd7   :  { %2676 = vmatprep.subr.mxu1 %v3616_v36  ;;  %2650 = vmatpush3.msra.mxu0 %v3777_v54  ;;  %v2080_v26 = vadd.f32 %v4262_v42, %v4261_v57 }
  0xd8   :  { %2677 = vmatpush3.msra.mxu1 %v3616_v36  ;;  %2651 = vmatprep.subr.mxu0 %v4256_v43  ;;  %v4263_v36 = vld [vmem:[#allocation21_spill] sm:$0xff] }
  0xd9   :  { %2678 = vmatprep.subr.mxu1 %v3636_v27  ;;  %2652 = vmatpush3.msra.mxu0 %v4256_v43  ;;  %v2081_v24 = vadd.f32 %v4263_v36, %v2080_v26 }
  0xda   :  { %2679 = vmatpush3.msra.mxu1 %v3636_v27  ;;  %2653 = vmatprep.subr.mxu0 %v4257_v53 }
  0xdb   :  { %2680 = vmatprep.subr.mxu1 %v3646_v4  ;;  %2654 = vmatpush3.msra.mxu0 %v4257_v53 }
  0xdc   :  { %2681 = vmatpush3.msra.mxu1 %v3646_v4  ;;  %2655 = vmatprep.subr.mxu0 %v3815_v22 }
  0xdd   :  { %2682 = vmatprep.subr.mxu1 %v3676_v11  ;;  %2656 = vmatpush3.msra.mxu0 %v3815_v22 }
  0xde   :  { %2683 = vmatpush3.msra.mxu1 %v3676_v11  ;;  %2657 = vmatprep.subr.mxu0 %v3831_v19 }
  0xdf   :  { %2684 = vmatprep.subr.mxu1 %v3694_v31  ;;  %2658 = vmatpush3.msra.mxu0 %v3831_v19 }
  0xe0   :  { %2685 = vmatpush3.msra.mxu1 %v3694_v31  ;;  %2659 = vmatprep.subr.mxu0 %v3838_v56 }
  0xe1   :  { %2686 = vmatprep.subr.mxu1 %v3706_v37  ;;  %2660 = vmatpush3.msra.mxu0 %v3838_v56 }
  0xe2   :  { %2661 = vmatprep.mubr.msk.f32.mxu0 %vm449_vm4, %v4174_v7  ;;  %2687 = vmatpush3.msra.mxu1 %v3706_v37 }
  0xe3   :  { %2662 = vmatmul.mubr.msk.f32.vlgmr.msra.gmra.mxu0 %vm452_vm5, %v4174_v7  ;;  %2688 = vmatprep.subr.mxu1 %v3725_v0 }
  0xe4   :  { %2689 = vmatpush3.msra.mxu1 %v3725_v0  ;;  %2696 = vmatprep.mubr.msk.f32.mxu1 %vm449_vm4, %v4174_v7 }
  0xe5   :  { %2690 = vmatprep.subr.mxu1 %v3746_v49  ;;  %2078 = vadd.xlane.f32.xlu0 %v2077_v20 }
  0xe6   :  { %2691 = vmatpush3.msra.mxu1 %v3746_v49 }
  0xe7   :  { %2692 = vmatprep.subr.mxu1 %v3769_v60 }
  0xe8   :  { %2693 = vmatpush3.msra.mxu1 %v3769_v60 }
  0xe9   :  { %2694 = vmatprep.subr.mxu1 %v3787_v10  ;;  %2082 = vadd.xlane.f32.xlu0 %v2081_v24 }
  0xea   :  { %2695 = vmatpush3.msra.mxu1 %v3787_v10 }
  0xeb   :  { %2697 = vmatmul.mubr.msk.f32.vlgmr.msra.gmra.mxu1 %vm452_vm5, %v4174_v7 }
  0xf7   :  { %v2185_v3 = vpop.f32.mrf.mxu0 }
  0xf9   :  { %v2186_v4 = vpop.f32.mrf.mxu0  ;;  %v2223_v9 = vpop.f32.mrf.mxu1 }
  0xfa   :  { %v2187_v8 = vadd.f32 %v2186_v4, %v2185_v3 }
  0xfb   :  { %v2224_v16 = vpop.f32.mrf.mxu1 }
  0xfc   :  { %v2225_v34 = vadd.f32 %v2224_v16, %v2223_v9 }
  0xfe   :  { %v823_v21 = vadd.f32 %v2225_v34, %v2187_v8 }
 0x10f   :  { %v2188_v11 = vpop.f32.mrf.mxu0 }
 0x111   :  { %v2189_v23 = vpop.f32.mrf.mxu0 }
 0x112   :  { %v2190_v54 = vadd.f32 %v2189_v23, %v2188_v11  ;;  %v454_v11 = vld [vmem:[#allocation2 + $0x8] sm:$0xff] }
 0x117   :  { %v2261_v37 = vpop.f32.mrf.mxu0 }
 0x118   :  { %v2226_v31 = vpop.f32.mrf.mxu1 }
 0x119   :  { %v2262_v0 = vpop.f32.mrf.mxu0 }
 0x11a   :  { %v2227_v29 = vpop.f32.mrf.mxu1  ;;  %v2263_v62 = vadd.f32 %v2262_v0, %v2261_v37 }
 0x11b   :  { %v2228_v55 = vadd.f32 %v2227_v29, %v2226_v31  ;;  %v453_v31 = vld [vmem:[#allocation2] sm:$0xff] }
 0x11c   :  { %v2264_v15 = vpop.f32.mrf.mxu0  ;;  %v968_v41 = vadd.f32 %v2263_v62, %v823_v21 }
 0x11d   :  { %v830_v44 = vadd.f32 %v2228_v55, %v2190_v54 }
 0x11e   :  { %v2265_v49 = vpop.f32.mrf.mxu0 }
 0x11f   :  { %v2266_v22 = vadd.f32 %v2265_v49, %v2264_v15 }
 0x121   :  { %v2299_v58 = vpop.f32.mrf.mxu1  ;;  %v977_v56 = vadd.f32 %v2266_v22, %v830_v44 }
 0x123   :  { %v2300_v14 = vpop.f32.mrf.mxu1 }
 0x124   :  { %v2301_v30 = vadd.f32 %v2300_v14, %v2299_v58 }
 0x126   :  { %v2302_v40 = vpop.f32.mrf.mxu1  ;;  %v1085_v43 = vadd.f32 %v2301_v30, %v968_v41 }
 0x128   :  { %v2303_v13 = vpop.f32.mrf.mxu1 }
 0x129   :  { %v2304_v25 = vadd.f32 %v2303_v13, %v2302_v40 }
 0x12b   :  { %v1096_v6 = vadd.f32 %v2304_v25, %v977_v56 }
 0x13b   :  { %v2337_v32 = vpop.f32.mrf.mxu0 }
 0x13d   :  { %v2338_v60 = vpop.f32.mrf.mxu0 }
 0x13e   :  { %v2339_v5 = vadd.f32 %v2338_v60, %v2337_v32 }
 0x140   :  { %v2340_v51 = vpop.f32.mrf.mxu0  ;;  %v1264_v48 = vadd.f32 %v2339_v5, %v1085_v43 }
 0x142   :  { %v2341_v28 = vpop.f32.mrf.mxu0 }
 0x143   :  { %v2342_v50 = vadd.f32 %v2341_v28, %v2340_v51 }
 0x145   :  { %v2375_v63 = vpop.f32.mrf.mxu1  ;;  %v1271_v53 = vadd.f32 %v2342_v50, %v1096_v6 }
 0x147   :  { %v2376_v39 = vpop.f32.mrf.mxu1 }
 0x148   :  { %v2377_v59 = vadd.f32 %v2376_v39, %v2375_v63 }
 0x14a   :  { %v2378_v10 = vpop.f32.mrf.mxu1  ;;  %v1375_v42 = vadd.f32 %v2377_v59, %v1264_v48 }
 0x14c   :  { %v2379_v19 = vpop.f32.mrf.mxu1 }
 0x14d   :  { %v2380_v52 = vadd.f32 %v2379_v19, %v2378_v10 }
 0x14f   :  { %v1382_v47 = vadd.f32 %v2380_v52, %v1271_v53 }
 0x15f   :  { %v2523_v17 = vpop.f32.mrf.mxu0 }
 0x160   :  { %v1483_v57 = vadd.f32 %v2523_v17, %v1382_v47 }
 0x161   :  { %v1472_v2 = vpop.f32.mrf.mxu0 }
 0x162   :  { %v1473_v24 = vadd.f32 %v1472_v2, %v1375_v42 }
 0x168   :  { %v2558_v45 = vpop.f32.mrf.mxu1 }
 0x169   :  { %v1640_v61 = vadd.f32 %v2558_v45, %v1483_v57 }
 0x16a   :  { %v1633_v20 = vpop.f32.mrf.mxu1 }
 0x16e   :  { %v2079_v27 = vpop.xlane.xlu0 %2078 }
 0x16f   :  { %v2084_v1 = vadd.f32 %v2079_v27, %v2074_v46  ;;  %v1634_v27 = vadd.f32 %v1633_v20, %v1473_v24 }
 0x171   :  { %2087 = vst.msk [vmem:[#allocation3] sm:$0xff] %vm62_vm6, %v2084_v1 }
 0x172   :  { %v2083_v7 = vpop.xlane.xlu0 %2082 }
 0x173   :  { %v2085_v12 = vadd.f32 %v2083_v7, %v2075_v38 }
 0x175   :  { %2088 = vst.msk [vmem:[#allocation3 + $0x8] sm:$0xff] %vm62_vm6, %v2085_v12 }
 0x178   :  { %v2096_v18 = vld [vmem:[#allocation3] sm:$0xff] }
 0x179   :  { %2098 = vst.msk [vmem:[%s4040_s3] sm:$0xff] %vm62_vm6, %v2096_v18 }
 0x17c   :  { %v2097_v33 = vld [vmem:[#allocation3 + $0x8] sm:$0xff] }
 0x17d   :  { %2099 = vst.msk [vmem:[%s4040_s3 + $0x8] sm:$0xff] %vm62_vm6, %v2097_v33  ;;  %s2728_s3 = smov [#allocation4]  }
 0x17e   :  { %s2105_s30 = sshll.u32 %s2728_s3, 4  ;;  %s2106_s30 = int_to_ptr.vmem [resolvable:$true] %s2105_s30 }
 0x17f   :  { %s2704_s4 = scalar_lea.vmem %s2106_s30, 256  ;;  %p2709_p1 = scmp.lt.s32.totalorder %s2106_s30, %s2106_s30 }
 0x180   :  { %p2705_p0 = scmp.ne.s32.totalorder %s2106_s30, %s2704_s4  ;;  %p2710_p2 = scmp.lt.s32.totalorder %s2704_s4, %s2704_s4 }
 0x181   :  { %v2593_v35 = vpop.f32.mrf.mxu0 }
 0x182   :  { %v1751_v3 = vadd.f32 %v2593_v35, %v1640_v61  ;;  %p2711_p3 = por %p2710_p2, %p2709_p1 }
 0x183   :  { %v1743_v26 = vpop.f32.mrf.mxu0 }
 0x184   :  { %v1744_v38 = vadd.f32 %v1743_v26, %v1634_v27  ;;  %p2712_p4 = pnand %p2711_p3, %p2705_p0 }
 0x18a   :  { %v2628_v36 = vpop.f32.mrf.mxu1 }
 0x18b   :  { %v1848_v7 = vadd.f32 %v2628_v36, %v1751_v3 }
 0x18c   :  { %v1839_v1 = vpop.f32.mrf.mxu1 }
 0x18d   :  { %v1840_v9 = vadd.f32 %v1839_v1, %v1744_v38 }
 0x1a3   :  { %v2663_v46 = vpop.f32.mrf.mxu0 }
 0x1a4   :  { %v1973_v12 = vadd.f32 %v2663_v46, %v1848_v7 }
 0x1a5   :  { %v1966_v4 = vpop.f32.mrf.mxu0 }
 0x1a6   :  { %v1967_v18 = vadd.f32 %v1966_v4, %v1840_v9 }
 0x1ab   :  { %v2698_v16 = vpop.f32.mrf.mxu1 }
 0x1ac   :  { %v2066_v23 = vadd.f32 %v2698_v16, %v1973_v12 }
 0x1ad   :  { %v2059_v33 = vpop.f32.mrf.mxu1 }
 0x1ae   :  { %v2070_v37 = vadd.f32 %v2066_v23, %v454_v11  ;;  %v2060_v29 = vadd.f32 %v2059_v33, %v1967_v18 }
 0x1b0   :  { %2073 = vst.msk [vmem:[#allocation2 + $0x8] sm:$0xff] %vm59_vm7, %v2070_v37  ;;  %v2069_v58 = vadd.f32 %v2060_v29, %v453_v31 }
 0x1b2   :  { %2072 = vst.msk [vmem:[#allocation2] sm:$0xff] %vm59_vm7, %v2069_v58 }
 0x1b7   :  { %v2093_v0 = vld [vmem:[#allocation2 + $0x8] sm:$0xff] }
 0x1b8   :  { %2095 = vst.msk [vmem:[#allocation4 + $0x8] sm:$0xff] %vm59_vm7, %v2093_v0 }
 0x1b9   :  { %v2092_v14 = vld [vmem:[#allocation2] sm:$0xff] }
 0x1ba   :  { %2094 = vst.msk [vmem:[#allocation4] sm:$0xff] %vm59_vm7, %v2092_v14 }
 0x1bb   :  { %2715 = shalt.err (!%p2712_p4)
}
 0x1bc   :  { %s2729_s5 = smov 128   ;;  %s2730_s6 = smov 8  }
 0x1bd   :  { %2111 = dma.vmem_to_hbm [thread:$0]  %s2106_s30, 256, %s4039_s2, [#allocation5], %s2729_s5, %s2729_s5, %s2730_s6  }
 0x1be   :  { %2724 = dma.done.wait [#allocation5], 256  }
 0x1bf   :  { %2725 = vsyncadd [#allocation5], 4294967040 }
 0x1c0   :  { %2119 = vsyncpa [#allocation5], 1 }

</bundles_post_ra>
